<compile_context>
chip_gen: v7x
topology: tpu7x:2x2x1
jax: 0.10.0
libtpu: 0.0.40
codegen_flags: <defaults>
</compile_context>

<pallas_src>
import functools

import jax
import jax.numpy as jnp
from jax.experimental import pallas as pl
from jax.experimental.pallas import tpu as pltpu


def _round_up(x, m):
    return (x + m - 1) // m * m


def _tpu_tiling_defaults():
    """(lane/row tile size, vmem_limit_bytes) chosen per TPU generation."""
    try:
        kind = jax.devices()[0].device_kind.lower()
    except Exception:
        kind = ""
    if "v7" in kind:
        # 64 MiB physical VMEM, 2 TensorCores -> smaller tiles, default scoped limit.
        return 512, 32 * 1024 * 1024
    if "v5" in kind or "v6" in kind:
        # 128 MiB VMEM, 1 TensorCore -> bigger tiles amortize per-step overhead.
        return 1024, 64 * 1024 * 1024
    return 512, 32 * 1024 * 1024


_TILE_M, _VMEM_LIMIT = _tpu_tiling_defaults()


# ---------------------------------------------------------------------------
# Pallas kernel 1: conv-as-matmul, swapped operands (large M on the lane axis).
#   out(Op, TM) = act( Wt(Op, Kp) @ x(Kp, TM) + b(Op, 1) )
# ---------------------------------------------------------------------------
def _wx_bias_act_kernel(w_ref, b_ref, x_ref, o_ref, *, apply_relu):
    acc = jnp.dot(w_ref[...], x_ref[...], preferred_element_type=jnp.float32)
    acc = acc + b_ref[...]                       # (Op, 1) broadcasts over lanes
    if apply_relu:
        acc = jnp.maximum(acc, 0.0)
    o_ref[...] = acc.astype(o_ref.dtype)


def wx_bias_relu(wT, b, x, *, apply_relu=True, out_dtype=jnp.bfloat16):
    """wT: (Op, Kp) bf16 (pre-padded), b: (Op, 1) f32, x: (K, M) -> (Op, M)."""
    Op, Kp = wT.shape
    K, M = x.shape
    Mp128 = _round_up(M, 128)
    TM = min(_TILE_M, Mp128)                     # multiple of 128
    Mp = _round_up(M, TM)
    xp = jnp.pad(x, ((0, Kp - K), (0, Mp - M))).astype(jnp.bfloat16)

    flops = 2 * Op * Kp * Mp
    bytes_accessed = (Op * Kp + Kp * Mp) * 2 + Op * 4 + Op * Mp * jnp.dtype(out_dtype).itemsize

    out = pl.pallas_call(
        functools.partial(_wx_bias_act_kernel, apply_relu=apply_relu),
        out_shape=jax.ShapeDtypeStruct((Op, Mp), out_dtype),
        grid=(Mp // TM,),
        in_specs=[
            pl.BlockSpec((Op, Kp), lambda i: (0, 0)),   # weights resident in VMEM
            pl.BlockSpec((Op, 1), lambda i: (0, 0)),    # bias resident
            pl.BlockSpec((Kp, TM), lambda i: (0, i)),   # patch tile, pipelined over M
        ],
        out_specs=pl.BlockSpec((Op, TM), lambda i: (0, i)),
        compiler_params=pltpu.CompilerParams(
            dimension_semantics=("parallel",),
            vmem_limit_bytes=_VMEM_LIMIT),
        cost_estimate=pl.CostEstimate(flops=flops, transcendentals=0,
                                      bytes_accessed=bytes_accessed),
    )(wT, b, xp)
    return out[:, :M]                            # Op == O for this model (16/32/64)


# ---------------------------------------------------------------------------
# Pallas kernel 2: fused FC head  out = (relu(x @ w1 + b1)) @ w2 + b2
# ---------------------------------------------------------------------------
def _fc_head_kernel(x_ref, w1_ref, b1_ref, w2_ref, b2_ref, o_ref):
    h = jnp.dot(x_ref[...], w1_ref[...], preferred_element_type=jnp.float32)
    h = jnp.maximum(h + b1_ref[...], 0.0)
    # TODO(synk): nn.Dropout between the two Linears is identity in eval mode.
    out = jnp.dot(h.astype(jnp.bfloat16), w2_ref[...],
                  preferred_element_type=jnp.float32)
    o_ref[...] = (out + b2_ref[...]).astype(o_ref.dtype)


def fc_head(x, w1, b1, w2, b2, *, out_size):
    """x: (M, K1), w1: (K1p, N1p) bf16, w2: (N1p, N2p) bf16 -> (M, out_size) f32."""
    M, K1 = x.shape
    K1p, N1p = w1.shape
    _, N2p = w2.shape
    Mp16 = _round_up(M, 16)                      # bf16-friendly sublane granule
    TM = min(_TILE_M, Mp16)
    Mp = _round_up(M, TM)
    xp = jnp.pad(x, ((0, Mp - M), (0, K1p - K1))).astype(jnp.bfloat16)

    flops = 2 * Mp * K1p * N1p + 2 * Mp * N1p * N2p
    bytes_accessed = (Mp * K1p + K1p * N1p + N1p * N2p) * 2 + Mp * N2p * 4

    out = pl.pallas_call(
        _fc_head_kernel,
        out_shape=jax.ShapeDtypeStruct((Mp, N2p), jnp.float32),
        grid=(Mp // TM,),
        in_specs=[
            pl.BlockSpec((TM, K1p), lambda i: (i, 0)),
            pl.BlockSpec((K1p, N1p), lambda i: (0, 0)),  # w1 resident
            pl.BlockSpec((1, N1p), lambda i: (0, 0)),
            pl.BlockSpec((N1p, N2p), lambda i: (0, 0)),  # w2 resident
            pl.BlockSpec((1, N2p), lambda i: (0, 0)),
        ],
        out_specs=pl.BlockSpec((TM, N2p), lambda i: (i, 0)),
        compiler_params=pltpu.CompilerParams(
            dimension_semantics=("parallel",),
            vmem_limit_bytes=_VMEM_LIMIT),
        cost_estimate=pl.CostEstimate(flops=flops, transcendentals=0,
                                      bytes_accessed=bytes_accessed),
    )(xp, w1, b1, w2, b2)
    return out[:M, :out_size]


# ---------------------------------------------------------------------------
# Glue: transposed im2col on channel-major activations (no transposes needed).
# ---------------------------------------------------------------------------
def conv_layer(a_cm, wT, b, *, ksize, stride):
    """a_cm: (C, N, H, W) channel-major bf16 -> (O, N, Ho, Wo) bf16."""
    # TODO(synk): patch extraction stays as XLA glue; fusing im2col into the
    # kernel (DMA raw activation strips) would cut HBM traffic further.
    C, N, H, W = a_cm.shape
    Ho = (H - ksize) // stride + 1
    Wo = (W - ksize) // stride + 1
    slices = [a_cm[:, :, di:di + stride * Ho:stride, dj:dj + stride * Wo:stride]
              for di in range(ksize) for dj in range(ksize)]
    # (k*k, C, N, Ho, Wo) -> (k*k*C, N*Ho*Wo); K index = (di*k+dj)*C + c
    pT = jnp.stack(slices, axis=0).reshape(ksize * ksize * C, N * Ho * Wo)
    out = wx_bias_relu(wT, b, pT, apply_relu=True)      # (O, N*Ho*Wo)
    O = wT.shape[0]
    return out.reshape(O, N, Ho, Wo)


# ---------------------------------------------------------------------------
# Parameter construction (PyTorch-shaped) and one-time pre-baking.
# ---------------------------------------------------------------------------
def init_params(key, in_size, out_size):
    ks = jax.random.split(key, 10)
    hidden_out = 64

    def conv_p(kw, kb, o, c, k):
        fan_in = c * k * k
        bound = 1.0 / jnp.sqrt(fan_in)
        w = jax.random.uniform(kw, (o, c, k, k), jnp.float32, -bound, bound)
        b = jax.random.uniform(kb, (o,), jnp.float32, -bound, bound)
        return w, b

    def lin_p(kw, kb, o, i):
        bound = 1.0 / jnp.sqrt(i)
        w = jax.random.uniform(kw, (o, i), jnp.float32, -bound, bound)
        b = jax.random.uniform(kb, (o,), jnp.float32, -bound, bound)
        return w, b

    return {
        "conv1": conv_p(ks[0], ks[1], 16, in_size, 5),
        "conv2": conv_p(ks[2], ks[3], 32, 16, 5),
        "conv3": conv_p(ks[4], ks[5], 64, 32, 5),
        "fc1": lin_p(ks[6], ks[7], 1024, hidden_out),
        "fc2": lin_p(ks[8], ks[9], out_size, 1024),
    }


def prepare_params(params):
    """Pre-transpose / pre-pad / bf16-cast weights once (hot path gets clean slabs)."""
    prep = {}
    for name in ("conv1", "conv2", "conv3"):
        w, b = params[name]                       # (O, C, k, k), (O,)
        O, C, kh, kw = w.shape
        K = kh * kw * C
        Kp = _round_up(K, 128)
        Op = _round_up(O, 16)                     # == O here (16/32/64)
        # K index = (di*k+dj)*C + c  -> matches the patchesT construction above.
        wT = w.transpose(0, 2, 3, 1).reshape(O, K)
        prep[name + "_w"] = jnp.pad(wT, ((0, Op - O), (0, Kp - K))).astype(jnp.bfloat16)
        prep[name + "_b"] = jnp.pad(b, ((0, Op - O),)).reshape(Op, 1).astype(jnp.float32)
    w1, b1 = params["fc1"]                        # (1024, 64), (1024,)
    w2, b2 = params["fc2"]                        # (out, 1024), (out,)
    N1, K1 = w1.shape
    N2, _ = w2.shape
    K1p, N1p, N2p = _round_up(K1, 128), _round_up(N1, 128), _round_up(N2, 128)
    prep["fc1_w"] = jnp.pad(w1.T, ((0, K1p - K1), (0, N1p - N1))).astype(jnp.bfloat16)
    prep["fc1_b"] = jnp.pad(b1, ((0, N1p - N1),)).reshape(1, N1p).astype(jnp.float32)
    prep["fc2_w"] = jnp.pad(w2.T, ((0, N1p - N1), (0, N2p - N2))).astype(jnp.bfloat16)
    prep["fc2_b"] = jnp.pad(b2, ((0, N2p - N2),)).reshape(1, N2p).astype(jnp.float32)
    return prep


# ---------------------------------------------------------------------------
# Forward pass (matches Conv2D.forward in eval mode).
# ---------------------------------------------------------------------------
def conv2d_forward(prep, x, *, out_size):
    # Model boundary: NCHW (PyTorch) -> channel-major (C, N, H, W), bf16.
    a = jnp.transpose(x, (1, 0, 2, 3)).astype(jnp.bfloat16)
    a = conv_layer(a, prep["conv1_w"], prep["conv1_b"], ksize=5, stride=2)
    a = conv_layer(a, prep["conv2_w"], prep["conv2_b"], ksize=5, stride=2)
    a = conv_layer(a, prep["conv3_w"], prep["conv3_b"], ksize=5, stride=2)
    # Flatten exactly like x.view(N, -1) on an NCHW tensor.
    O, N, Ho, Wo = a.shape
    flat = jnp.transpose(a, (1, 0, 2, 3)).reshape(N, O * Ho * Wo)
    # TODO(synk): nn.Dropout after flatten is identity in eval mode; training-mode
    # dropout is not modeled.
    return fc_head(flat, prep["fc1_w"], prep["fc1_b"],
                   prep["fc2_w"], prep["fc2_b"], out_size=out_size)


if __name__ == "__main__":
    in_size, out_size = 3, 10
    batch, spatial = 2, 29   # 29 -> 13 -> 5 -> 1 spatial so flatten size == 64

    key = jax.random.PRNGKey(0)
    kx, kp = jax.random.split(key)
    x = jax.random.normal(kx, (batch, in_size, spatial, spatial), jnp.float32)
    params = init_params(kp, in_size, out_size)
    prep = prepare_params(params)      # one-time pre-baked slabs (bf16, padded)

    fwd = jax.jit(functools.partial(conv2d_forward, out_size=out_size))
    out = fwd(prep, x)
    jax.block_until_ready(out)
    assert out.shape == (batch, out_size), out.shape
    print("KERNEL_OK")
</pallas_src>

<mosaic_0001>
module attributes {stable_mosaic.version = 11 : i64} {
  func.func @_wx_bias_act_kernel(%arg0: i32, %arg1: memref<16x128xbf16, #tpu.memory_space<vmem>>, %arg2: memref<16x1xf32, #tpu.memory_space<vmem>>, %arg3: memref<128x384xbf16, #tpu.memory_space<vmem>>, %arg4: memref<16x384xbf16, #tpu.memory_space<vmem>>) attributes {dimension_semantics = [#tpu.dimension_semantics<parallel>], iteration_bounds = array<i64: 1>, scalar_prefetch = 0 : i64, scratch_operands = 0 : i64, tpu.core_type = #tpu.core_type<tc>, window_params = [{pipeline_mode = #tpu.pipeline_mode<synchronous>, transform_indices = @transform_0, window_bounds = array<i64: 16, 128>}, {pipeline_mode = #tpu.pipeline_mode<synchronous>, transform_indices = @transform_1, window_bounds = array<i64: 16, 1>}, {transform_indices = @transform_2, window_bounds = array<i64: 128, 384>}, {transform_indices = @transform_3, window_bounds = array<i64: 16, 384>}]} {
    %c0 = arith.constant 0 : index
    %c0_0 = arith.constant 0 : index
    %0 = vector.load %arg1[%c0, %c0_0] : memref<16x128xbf16, #tpu.memory_space<vmem>>, vector<16x128xbf16>
    %c0_1 = arith.constant 0 : index
    %c0_2 = arith.constant 0 : index
    %1 = vector.load %arg3[%c0_1, %c0_2] : memref<128x384xbf16, #tpu.memory_space<vmem>>, vector<128x384xbf16>
    %cst = arith.constant dense<0.000000e+00> : vector<16x384xf32>
    %2 = tpu.matmul %0, %1, %cst {dimension_numbers = #tpu.dot_dimension_numbers<[1], [0], [0], [1], [0, 0, 1, 1], [], []>} : vector<16x128xbf16>, vector<128x384xbf16>, vector<16x384xf32> -> vector<16x384xf32>
    %c0_3 = arith.constant 0 : index
    %c0_4 = arith.constant 0 : index
    %3 = vector.load %arg2[%c0_3, %c0_4] : memref<16x1xf32, #tpu.memory_space<vmem>>, vector<16x1xf32>
    %4 = vector.broadcast %3 : vector<16x1xf32> to vector<16x384xf32>
    %5 = arith.addf %2, %4 : vector<16x384xf32>
    %cst_5 = arith.constant 0.000000e+00 : f32
    %6 = vector.broadcast %cst_5 : f32 to vector<16x384xf32>
    %7 = arith.maximumf %5, %6 : vector<16x384xf32>
    %8 = arith.truncf %7 : vector<16x384xf32> to vector<16x384xbf16>
    %c0_6 = arith.constant 0 : index
    %c0_7 = arith.constant 0 : index
    %9 = vector.load %arg4[%c0_6, %c0_7] : memref<16x384xbf16, #tpu.memory_space<vmem>>, vector<16x384xbf16>
    tpu.vector_store %arg4[%c0_6, %c0_7], %8 {strides = array<i32>} : memref<16x384xbf16, #tpu.memory_space<vmem>>, vector<16x384xbf16>,
    return
  }
  func.func @transform_0(%arg0: i32) -> (i32, i32) {
    %c0_i32 = arith.constant 0 : i32
    %c0_i32_0 = arith.constant 0 : i32
    %c0_i32_1 = arith.constant 0 : i32
    return %c0_i32, %c0_i32_0 : i32, i32
  }
  func.func @transform_1(%arg0: i32) -> (i32, i32) {
    %c0_i32 = arith.constant 0 : i32
    %c0_i32_0 = arith.constant 0 : i32
    %c0_i32_1 = arith.constant 0 : i32
    return %c0_i32, %c0_i32_0 : i32, i32
  }
  func.func @transform_2(%arg0: i32) -> (i32, i32) {
    %c0_i32 = arith.constant 0 : i32
    %c0_i32_0 = arith.constant 0 : i32
    return %c0_i32, %arg0 : i32, i32
  }
  func.func @transform_3(%arg0: i32) -> (i32, i32) {
    %c0_i32 = arith.constant 0 : i32
    %c0_i32_0 = arith.constant 0 : i32
    return %c0_i32, %arg0 : i32, i32
  }
}

module attributes {stable_mosaic.version = 11 : i64} {
  func.func @_wx_bias_act_kernel(%arg0: i32, %arg1: memref<32x512xbf16, #tpu.memory_space<vmem>>, %arg2: memref<32x1xf32, #tpu.memory_space<vmem>>, %arg3: memref<512x128xbf16, #tpu.memory_space<vmem>>, %arg4: memref<32x128xbf16, #tpu.memory_space<vmem>>) attributes {dimension_semantics = [#tpu.dimension_semantics<parallel>], iteration_bounds = array<i64: 1>, scalar_prefetch = 0 : i64, scratch_operands = 0 : i64, tpu.core_type = #tpu.core_type<tc>, window_params = [{pipeline_mode = #tpu.pipeline_mode<synchronous>, transform_indices = @transform_0, window_bounds = array<i64: 32, 512>}, {pipeline_mode = #tpu.pipeline_mode<synchronous>, transform_indices = @transform_1, window_bounds = array<i64: 32, 1>}, {transform_indices = @transform_2, window_bounds = array<i64: 512, 128>}, {transform_indices = @transform_3, window_bounds = array<i64: 32, 128>}]} {
    %c0 = arith.constant 0 : index
    %c0_0 = arith.constant 0 : index
    %0 = vector.load %arg1[%c0, %c0_0] : memref<32x512xbf16, #tpu.memory_space<vmem>>, vector<32x512xbf16>
    %c0_1 = arith.constant 0 : index
    %c0_2 = arith.constant 0 : index
    %1 = vector.load %arg3[%c0_1, %c0_2] : memref<512x128xbf16, #tpu.memory_space<vmem>>, vector<512x128xbf16>
    %cst = arith.constant dense<0.000000e+00> : vector<32x128xf32>
    %2 = tpu.matmul %0, %1, %cst {dimension_numbers = #tpu.dot_dimension_numbers<[1], [0], [0], [1], [0, 0, 1, 1], [], []>} : vector<32x512xbf16>, vector<512x128xbf16>, vector<32x128xf32> -> vector<32x128xf32>
    %c0_3 = arith.constant 0 : index
    %c0_4 = arith.constant 0 : index
    %3 = vector.load %arg2[%c0_3, %c0_4] : memref<32x1xf32, #tpu.memory_space<vmem>>, vector<32x1xf32>
    %4 = vector.broadcast %3 : vector<32x1xf32> to vector<32x128xf32>
    %5 = arith.addf %2, %4 : vector<32x128xf32>
    %cst_5 = arith.constant 0.000000e+00 : f32
    %6 = vector.broadcast %cst_5 : f32 to vector<32x128xf32>
    %7 = arith.maximumf %5, %6 : vector<32x128xf32>
    %8 = arith.truncf %7 : vector<32x128xf32> to vector<32x128xbf16>
    %c0_6 = arith.constant 0 : index
    %c0_7 = arith.constant 0 : index
    %9 = vector.load %arg4[%c0_6, %c0_7] : memref<32x128xbf16, #tpu.memory_space<vmem>>, vector<32x128xbf16>
    tpu.vector_store %arg4[%c0_6, %c0_7], %8 {strides = array<i32>} : memref<32x128xbf16, #tpu.memory_space<vmem>>, vector<32x128xbf16>,
    return
  }
  func.func @transform_0(%arg0: i32) -> (i32, i32) {
    %c0_i32 = arith.constant 0 : i32
    %c0_i32_0 = arith.constant 0 : i32
    %c0_i32_1 = arith.constant 0 : i32
    return %c0_i32, %c0_i32_0 : i32, i32
  }
  func.func @transform_1(%arg0: i32) -> (i32, i32) {
    %c0_i32 = arith.constant 0 : i32
    %c0_i32_0 = arith.constant 0 : i32
    %c0_i32_1 = arith.constant 0 : i32
    return %c0_i32, %c0_i32_0 : i32, i32
  }
  func.func @transform_2(%arg0: i32) -> (i32, i32) {
    %c0_i32 = arith.constant 0 : i32
    %c0_i32_0 = arith.constant 0 : i32
    return %c0_i32, %arg0 : i32, i32
  }
  func.func @transform_3(%arg0: i32) -> (i32, i32) {
    %c0_i32 = arith.constant 0 : i32
    %c0_i32_0 = arith.constant 0 : i32
    return %c0_i32, %arg0 : i32, i32
  }
}

module attributes {stable_mosaic.version = 11 : i64} {
  func.func @_wx_bias_act_kernel(%arg0: i32, %arg1: memref<64x896xbf16, #tpu.memory_space<vmem>>, %arg2: memref<64x1xf32, #tpu.memory_space<vmem>>, %arg3: memref<896x128xbf16, #tpu.memory_space<vmem>>, %arg4: memref<64x128xbf16, #tpu.memory_space<vmem>>) attributes {dimension_semantics = [#tpu.dimension_semantics<parallel>], iteration_bounds = array<i64: 1>, scalar_prefetch = 0 : i64, scratch_operands = 0 : i64, tpu.core_type = #tpu.core_type<tc>, window_params = [{pipeline_mode = #tpu.pipeline_mode<synchronous>, transform_indices = @transform_0, window_bounds = array<i64: 64, 896>}, {pipeline_mode = #tpu.pipeline_mode<synchronous>, transform_indices = @transform_1, window_bounds = array<i64: 64, 1>}, {transform_indices = @transform_2, window_bounds = array<i64: 896, 128>}, {transform_indices = @transform_3, window_bounds = array<i64: 64, 128>}]} {
    %c0 = arith.constant 0 : index
    %c0_0 = arith.constant 0 : index
    %0 = vector.load %arg1[%c0, %c0_0] : memref<64x896xbf16, #tpu.memory_space<vmem>>, vector<64x896xbf16>
    %c0_1 = arith.constant 0 : index
    %c0_2 = arith.constant 0 : index
    %1 = vector.load %arg3[%c0_1, %c0_2] : memref<896x128xbf16, #tpu.memory_space<vmem>>, vector<896x128xbf16>
    %cst = arith.constant dense<0.000000e+00> : vector<64x128xf32>
    %2 = tpu.matmul %0, %1, %cst {dimension_numbers = #tpu.dot_dimension_numbers<[1], [0], [0], [1], [0, 0, 1, 1], [], []>} : vector<64x896xbf16>, vector<896x128xbf16>, vector<64x128xf32> -> vector<64x128xf32>
    %c0_3 = arith.constant 0 : index
    %c0_4 = arith.constant 0 : index
    %3 = vector.load %arg2[%c0_3, %c0_4] : memref<64x1xf32, #tpu.memory_space<vmem>>, vector<64x1xf32>
    %4 = vector.broadcast %3 : vector<64x1xf32> to vector<64x128xf32>
    %5 = arith.addf %2, %4 : vector<64x128xf32>
    %cst_5 = arith.constant 0.000000e+00 : f32
    %6 = vector.broadcast %cst_5 : f32 to vector<64x128xf32>
    %7 = arith.maximumf %5, %6 : vector<64x128xf32>
    %8 = arith.truncf %7 : vector<64x128xf32> to vector<64x128xbf16>
    %c0_6 = arith.constant 0 : index
    %c0_7 = arith.constant 0 : index
    %9 = vector.load %arg4[%c0_6, %c0_7] : memref<64x128xbf16, #tpu.memory_space<vmem>>, vector<64x128xbf16>
    tpu.vector_store %arg4[%c0_6, %c0_7], %8 {strides = array<i32>} : memref<64x128xbf16, #tpu.memory_space<vmem>>, vector<64x128xbf16>,
    return
  }
  func.func @transform_0(%arg0: i32) -> (i32, i32) {
    %c0_i32 = arith.constant 0 : i32
    %c0_i32_0 = arith.constant 0 : i32
    %c0_i32_1 = arith.constant 0 : i32
    return %c0_i32, %c0_i32_0 : i32, i32
  }
  func.func @transform_1(%arg0: i32) -> (i32, i32) {
    %c0_i32 = arith.constant 0 : i32
    %c0_i32_0 = arith.constant 0 : i32
    %c0_i32_1 = arith.constant 0 : i32
    return %c0_i32, %c0_i32_0 : i32, i32
  }
  func.func @transform_2(%arg0: i32) -> (i32, i32) {
    %c0_i32 = arith.constant 0 : i32
    %c0_i32_0 = arith.constant 0 : i32
    return %c0_i32, %arg0 : i32, i32
  }
  func.func @transform_3(%arg0: i32) -> (i32, i32) {
    %c0_i32 = arith.constant 0 : i32
    %c0_i32_0 = arith.constant 0 : i32
    return %c0_i32, %arg0 : i32, i32
  }
}

module attributes {stable_mosaic.version = 11 : i64} {
  func.func @_fc_head_kernel(%arg0: i32, %arg1: memref<16x128xbf16, #tpu.memory_space<vmem>>, %arg2: memref<128x1024xbf16, #tpu.memory_space<vmem>>, %arg3: memref<1x1024xf32, #tpu.memory_space<vmem>>, %arg4: memref<1024x128xbf16, #tpu.memory_space<vmem>>, %arg5: memref<1x128xf32, #tpu.memory_space<vmem>>, %arg6: memref<16x128xf32, #tpu.memory_space<vmem>>) attributes {dimension_semantics = [#tpu.dimension_semantics<parallel>], iteration_bounds = array<i64: 1>, scalar_prefetch = 0 : i64, scratch_operands = 0 : i64, tpu.core_type = #tpu.core_type<tc>, window_params = [{transform_indices = @transform_0, window_bounds = array<i64: 16, 128>}, {pipeline_mode = #tpu.pipeline_mode<synchronous>, transform_indices = @transform_1, window_bounds = array<i64: 128, 1024>}, {pipeline_mode = #tpu.pipeline_mode<synchronous>, transform_indices = @transform_2, window_bounds = array<i64: 1, 1024>}, {pipeline_mode = #tpu.pipeline_mode<synchronous>, transform_indices = @transform_3, window_bounds = array<i64: 1024, 128>}, {pipeline_mode = #tpu.pipeline_mode<synchronous>, transform_indices = @transform_4, window_bounds = array<i64: 1, 128>}, {transform_indices = @transform_5, window_bounds = array<i64: 16, 128>}]} {
    %c0 = arith.constant 0 : index
    %c0_0 = arith.constant 0 : index
    %0 = vector.load %arg1[%c0, %c0_0] : memref<16x128xbf16, #tpu.memory_space<vmem>>, vector<16x128xbf16>
    %c0_1 = arith.constant 0 : index
    %c0_2 = arith.constant 0 : index
    %1 = vector.load %arg2[%c0_1, %c0_2] : memref<128x1024xbf16, #tpu.memory_space<vmem>>, vector<128x1024xbf16>
    %cst = arith.constant dense<0.000000e+00> : vector<16x1024xf32>
    %2 = tpu.matmul %0, %1, %cst {dimension_numbers = #tpu.dot_dimension_numbers<[1], [0], [0], [1], [0, 0, 1, 1], [], []>} : vector<16x128xbf16>, vector<128x1024xbf16>, vector<16x1024xf32> -> vector<16x1024xf32>
    %c0_3 = arith.constant 0 : index
    %c0_4 = arith.constant 0 : index
    %3 = vector.load %arg3[%c0_3, %c0_4] : memref<1x1024xf32, #tpu.memory_space<vmem>>, vector<1x1024xf32>
    %4 = vector.broadcast %3 : vector<1x1024xf32> to vector<16x1024xf32>
    %5 = arith.addf %2, %4 : vector<16x1024xf32>
    %cst_5 = arith.constant 0.000000e+00 : f32
    %6 = vector.broadcast %cst_5 : f32 to vector<16x1024xf32>
    %7 = arith.maximumf %5, %6 : vector<16x1024xf32>
    %8 = arith.truncf %7 : vector<16x1024xf32> to vector<16x1024xbf16>
    %c0_6 = arith.constant 0 : index
    %c0_7 = arith.constant 0 : index
    %9 = vector.load %arg4[%c0_6, %c0_7] : memref<1024x128xbf16, #tpu.memory_space<vmem>>, vector<1024x128xbf16>
    %cst_8 = arith.constant dense<0.000000e+00> : vector<16x128xf32>
    %10 = tpu.matmul %8, %9, %cst_8 {dimension_numbers = #tpu.dot_dimension_numbers<[1], [0], [0], [1], [0, 0, 1, 1], [], []>} : vector<16x1024xbf16>, vector<1024x128xbf16>, vector<16x128xf32> -> vector<16x128xf32>
    %c0_9 = arith.constant 0 : index
    %c0_10 = arith.constant 0 : index
    %11 = vector.load %arg5[%c0_9, %c0_10] : memref<1x128xf32, #tpu.memory_space<vmem>>, vector<1x128xf32>
    %12 = vector.broadcast %11 : vector<1x128xf32> to vector<16x128xf32>
    %13 = arith.addf %10, %12 : vector<16x128xf32>
    %c0_11 = arith.constant 0 : index
    %c0_12 = arith.constant 0 : index
    %14 = vector.load %arg6[%c0_11, %c0_12] : memref<16x128xf32, #tpu.memory_space<vmem>>, vector<16x128xf32>
    tpu.vector_store %arg6[%c0_11, %c0_12], %13 {strides = array<i32>} : memref<16x128xf32, #tpu.memory_space<vmem>>, vector<16x128xf32>,
    return
  }
  func.func @transform_0(%arg0: i32) -> (i32, i32) {
    %c0_i32 = arith.constant 0 : i32
    %c0_i32_0 = arith.constant 0 : i32
    return %arg0, %c0_i32 : i32, i32
  }
  func.func @transform_1(%arg0: i32) -> (i32, i32) {
    %c0_i32 = arith.constant 0 : i32
    %c0_i32_0 = arith.constant 0 : i32
    %c0_i32_1 = arith.constant 0 : i32
    return %c0_i32, %c0_i32_0 : i32, i32
  }
  func.func @transform_2(%arg0: i32) -> (i32, i32) {
    %c0_i32 = arith.constant 0 : i32
    %c0_i32_0 = arith.constant 0 : i32
    %c0_i32_1 = arith.constant 0 : i32
    return %c0_i32, %c0_i32_0 : i32, i32
  }
  func.func @transform_3(%arg0: i32) -> (i32, i32) {
    %c0_i32 = arith.constant 0 : i32
    %c0_i32_0 = arith.constant 0 : i32
    %c0_i32_1 = arith.constant 0 : i32
    return %c0_i32, %c0_i32_0 : i32, i32
  }
  func.func @transform_4(%arg0: i32) -> (i32, i32) {
    %c0_i32 = arith.constant 0 : i32
    %c0_i32_0 = arith.constant 0 : i32
    %c0_i32_1 = arith.constant 0 : i32
    return %c0_i32, %c0_i32_0 : i32, i32
  }
  func.func @transform_5(%arg0: i32) -> (i32, i32) {
    %c0_i32 = arith.constant 0 : i32
    %c0_i32_0 = arith.constant 0 : i32
    return %arg0, %c0_i32 : i32, i32
  }
}

</mosaic_0001>

<bundles_post_ra>
// kernel: conv2d_forward.4
= control target key start
LH: loop header
LB: loop body
LE: loop exit
PB: predicated region body
PF: predicated region fallthrough
CT: control target
= control target key end

     0   :  { %v412_v0 = vmov 0.0   ;;  %vm413_vm0 = vmmov 0   ;;  %v414_v3 = vmov 0   ;;  %s528_s2 = inlined_call_operand.vmem [shape: bf16[128,384], index: 2, kind: input, shape index: {}]   ;;  %s529_s1 = inlined_call_operand.vmem [shape: f32[16,1], index: 1, kind: input, shape index: {}]   ;;  %s530_s0 = inlined_call_operand.vmem [shape: bf16[16,128], index: 0, kind: input, shape index: {}]   ;;  %s531_s3 = inlined_call_operand.vmem [shape: bf16[16,384], index: 3, kind: output, shape index: {}]  }
   0x1   :  { %355 = vmatprep.subr.bf16.mxu1 %v412_v0  ;;  %v379_v1 = vld [vmem:[%s528_s2 + $0x4] ss:$12 sps:$4 sm:$0xff]   ;;  %371 = vmatprep.mubr.msk.bf16.mxu1 %vm413_vm0, %v412_v0  ;;  %v381_v2 = vld [vmem:[%s528_s2 + $0x8] ss:$12 sps:$4 sm:$0xff]   ;;  %v382_v4 = vld [vmem:[%s528_s2] ss:$12 sps:$4 sm:$0xff]  }
   0x2   :  { %227 = vmatprep.mubr.bf16.mxu0 %v414_v3  ;;  %378 = vset.pattern.permute.xlu0 %v414_v3  ;;  %v383_v5 = vld [vmem:[%s528_s2 + $0x1c] ss:$12 sps:$4 sm:$0xff]   ;;  %v385_v6 = vld [vmem:[%s528_s2 + $0x20] ss:$12 sps:$4 sm:$0xff]   ;;  %v386_v7 = vld [vmem:[%s528_s2 + $0x18] ss:$12 sps:$4 sm:$0xff]  }
   0x3   :  { %195 = vmatprep.subr.bf16.mxu0 %v379_v1  ;;  %356 = vmatpush3.bf16.msra.mxu1 %v381_v2  ;;  %v387_v8 = vld [vmem:[%s528_s2 + $0x34] ss:$12 sps:$4 sm:$0xff]   ;;  %v389_v9 = vld [vmem:[%s528_s2 + $0x38] ss:$12 sps:$4 sm:$0xff]   ;;  %v390_v10 = vld [vmem:[%s528_s2 + $0x30] ss:$12 sps:$4 sm:$0xff]  }
   0x4   :  { %196 = vmatpush1.bf16.msra.mxu0 %v382_v4  ;;  %357 = vmatprep.subr.bf16.mxu1 %v412_v0  ;;  %v391_v11 = vld [vmem:[%s528_s2 + $0x4c] ss:$12 sps:$4 sm:$0xff]   ;;  %v393_v12 = vld [vmem:[%s528_s2 + $0x50] ss:$12 sps:$4 sm:$0xff]   ;;  %v394_v13 = vld [vmem:[%s528_s2 + $0x48] ss:$12 sps:$4 sm:$0xff]  }
   0x5   :  { %197 = vmatprep.subr.bf16.mxu0 %v383_v5  ;;  %v395_v14 = vld [vmem:[%s528_s2 + $0x64] ss:$12 sps:$4 sm:$0xff]   ;;  %v397_v15 = vld [vmem:[%s528_s2 + $0x68] ss:$12 sps:$4 sm:$0xff]   ;;  %v398_v16 = vld [vmem:[%s528_s2 + $0x60] ss:$12 sps:$4 sm:$0xff]  }
   0x6   :  { %v399_v17 = vld [vmem:[%s528_s2 + $0x7c] ss:$12 sps:$4 sm:$0xff]   ;;  %v401_v18 = vld [vmem:[%s528_s2 + $0x80] ss:$12 sps:$4 sm:$0xff]   ;;  %v402_v20 = vld [vmem:[%s528_s2 + $0x78] ss:$12 sps:$4 sm:$0xff]  }
   0x7   :  { %358 = vmatpush3.bf16.msra.mxu1 %v385_v6  ;;  %v49_v19 = vld [vmem:[%s529_s1] sm:$0xff]  ;;  %v50_v22 = vld [vmem:[%s529_s1 + $0x8] sm:$0xff]  ;;  %v406_v24 = vld [vmem:[%s528_s2 + $0x90] ss:$12 sps:$4 sm:$0xff]  }
   0x8   :  { %198 = vmatpush1.bf16.msra.mxu0 %v386_v7  ;;  %359 = vmatprep.subr.bf16.mxu1 %v412_v0  ;;  %v403_v21 = vld [vmem:[%s528_s2 + $0x94] ss:$12 sps:$4 sm:$0xff]   ;;  %v405_v23 = vld [vmem:[%s528_s2 + $0x98] ss:$12 sps:$4 sm:$0xff]   ;;  %v409_v26 = vld [vmem:[%s528_s2 + $0xb0] ss:$12 sps:$4 sm:$0xff]  }
   0x9   :  { %199 = vmatprep.subr.bf16.mxu0 %v387_v8  ;;  %53 = vperm.xlu0 %378, %v49_v19   ;;  %v407_v25 = vld [vmem:[%s528_s2 + $0xac] ss:$12 sps:$4 sm:$0xff]   ;;  %v410_v27 = vld [vmem:[%s528_s2 + $0xa8] ss:$12 sps:$4 sm:$0xff]   ;;  %v411_v28 = vld [vmem:[%s530_s0] sm:$0xff]  }
   0xb   :  { %360 = vmatpush3.bf16.msra.mxu1 %v389_v9 }
   0xc   :  { %200 = vmatpush1.bf16.msra.mxu0 %v390_v10  ;;  %361 = vmatprep.subr.bf16.mxu1 %v412_v0 }
   0xd   :  { %201 = vmatprep.subr.bf16.mxu0 %v391_v11  ;;  %58 = vperm.xlu0 %378, %v50_v22  }
   0xf   :  { %362 = vmatpush3.bf16.msra.mxu1 %v393_v12 }
  0x10   :  { %202 = vmatpush1.bf16.msra.mxu0 %v394_v13  ;;  %363 = vmatprep.subr.bf16.mxu1 %v412_v0 }
  0x11   :  { %203 = vmatprep.subr.bf16.mxu0 %v395_v14 }
  0x13   :  { %364 = vmatpush3.bf16.msra.mxu1 %v397_v15 }
  0x14   :  { %204 = vmatpush1.bf16.msra.mxu0 %v398_v16  ;;  %365 = vmatprep.subr.bf16.mxu1 %v412_v0 }
  0x15   :  { %205 = vmatprep.subr.bf16.mxu0 %v399_v17 }
  0x17   :  { %366 = vmatpush3.bf16.msra.mxu1 %v401_v18 }
  0x18   :  { %206 = vmatpush1.bf16.msra.mxu0 %v402_v20  ;;  %367 = vmatprep.subr.bf16.mxu1 %v412_v0 }
  0x19   :  { %207 = vmatprep.subr.bf16.mxu0 %v403_v21 }
  0x1b   :  { %368 = vmatpush3.bf16.msra.mxu1 %v405_v23 }
  0x1c   :  { %208 = vmatpush1.bf16.msra.mxu0 %v406_v24  ;;  %369 = vmatprep.subr.bf16.mxu1 %v412_v0 }
  0x1d   :  { %209 = vmatprep.subr.bf16.mxu0 %v407_v25 }
  0x1f   :  { %370 = vmatpush3.bf16.msra.mxu1 %v409_v26 }
  0x20   :  { %210 = vmatpush1.bf16.msra.mxu0 %v410_v27 }
  0x22   :  { %372 = vmatmul.mubr.bf16.vlgmr.msra.gmra.mrb[0].mxu1 %v411_v28 }
  0x23   :  { %228 = vmatmul.mubr.bf16.vlgmr.msra.gmra.mrb[0].mxu0 %v411_v28 }
  0x88   :  { %v54_v29 = vpop.permute.xlu0 %53 }
  0x8c   :  { %v59_v30 = vpop.permute.xlu0 %58 }
  0xf5   :  { %v272_v31 = vpop.f32.mrb[0].mxu1 }
  0xf6   :  { %v273_v32 = vadd.f32 %v272_v31, %v54_v29  ;;  %v229_v33 = vpop.f32.mrb[0].mxu0  ;;  %v373_v34 = vpop.f32.mrb[1].mxu1 }
  0xf7   :  { %v230_v35 = vadd.f32 %v229_v33, %v54_v29  ;;  %v231_v36 = vpop.f32.mrb[1].mxu0  ;;  %v275_v37 = vpop.f32.mrb[2].mxu1 }
  0xf8   :  { %v281_v38 = vmax.f32 %v273_v32, 0.0  ;;  %v232_v39 = vadd.f32 %v231_v36, %v54_v29  ;;  %v276_v40 = vadd.f32 %v275_v37, %v59_v30  ;;  %v233_v41 = vpop.f32.mrb[2].mxu0  ;;  %v374_v42 = vpop.f32.mrb[3].mxu1 }
  0xf9   :  { %v279_v43 = vmax.f32 %v230_v35, 0.0  ;;  %v234_v44 = vadd.f32 %v233_v41, %v59_v30  ;;  %v235_v45 = vpop.f32.mrb[3].mxu0 }
  0xfa   :  { %v343_v46 = vpack.c.bf16 %v281_v38, %v281_v38  ;;  %v280_v47 = vmax.f32 %v232_v39, 0.0  ;;  %v284_v48 = vmax.f32 %v276_v40, 0.0  ;;  %v236_v49 = vadd.f32 %v235_v45, %v59_v30 }
  0xfb   :  { %v282_v50 = vmax.f32 %v234_v44, 0.0 }
  0xfc   :  { %306 = vst [vmem:[%s531_s3 + $0x8] sm:$0xf] %v343_v46  ;;  %v342_v51 = vpack.c.bf16 %v280_v47, %v279_v43  ;;  %v345_v52 = vpack.c.bf16 %v284_v48, %v284_v48  ;;  %v283_v53 = vmax.f32 %v236_v49, 0.0 }
  0xfe   :  { %305 = vst [vmem:[%s531_s3] sm:$0xff] %v342_v51  ;;  %308 = vst [vmem:[%s531_s3 + $0x14] sm:$0xf] %v345_v52  ;;  %v344_v54 = vpack.c.bf16 %v283_v53, %v282_v50 }
 0x100   :  { %307 = vst [vmem:[%s531_s3 + $0xc] sm:$0xff] %v344_v54 }

// kernel: conv2d_forward.5
= control target key start
LH: loop header
LB: loop body
LE: loop exit
PB: predicated region body
PF: predicated region fallthrough
CT: control target
= control target key end

     0   :  { %v631_v1 = vmov 0   ;;  %s790_s2 = inlined_call_operand.vmem [shape: bf16[512,128], index: 2, kind: input, shape index: {}]   ;;  %s791_s0 = inlined_call_operand.vmem [shape: bf16[32,512], index: 0, kind: input, shape index: {}]   ;;  %s792_s1 = inlined_call_operand.vmem [shape: f32[32,1], index: 1, kind: input, shape index: {}]   ;;  %s793_s3 = inlined_call_operand.vmem [shape: bf16[32,128], index: 3, kind: output, shape index: {}]  }
   0x1   :  { %v587_v0 = vld [vmem:[%s790_s2 + $0x40] sm:$0xff]   ;;  %585 = vset.pattern.permute.xlu0 %v631_v1  ;;  %586 = vset.pattern.permute.xlu1 %v631_v1  ;;  %v591_v5 = vld [vmem:[%s790_s2 + $0x48] sm:$0xff]   ;;  %v595_v9 = vld [vmem:[%s790_s2 + $0x50] sm:$0xff]  }
   0x2   :  { %v588_v2 = vld [vmem:[%s790_s2 + $0xc0] sm:$0xff]   ;;  %528 = vmatprep.subr.bf16.mxu0 %v587_v0  ;;  %v592_v6 = vld [vmem:[%s790_s2 + $0xc8] sm:$0xff]   ;;  %v596_v10 = vld [vmem:[%s790_s2 + $0xd0] sm:$0xff]  }
   0x3   :  { %v589_v3 = vld [vmem:[%s790_s2] sm:$0xff]   ;;  %556 = vmatprep.subr.bf16.mxu1 %v588_v2  ;;  %v593_v7 = vld [vmem:[%s790_s2 + $0x8] sm:$0xff]   ;;  %v597_v11 = vld [vmem:[%s790_s2 + $0x10] sm:$0xff]  }
   0x4   :  { %v590_v4 = vld [vmem:[%s790_s2 + $0x80] sm:$0xff]   ;;  %529 = vmatpush3.bf16.msra.mxu0 %v589_v3  ;;  %v594_v8 = vld [vmem:[%s790_s2 + $0x88] sm:$0xff]   ;;  %v598_v12 = vld [vmem:[%s790_s2 + $0x90] sm:$0xff]  }
   0x5   :  { %557 = vmatpush3.bf16.msra.mxu1 %v590_v4  ;;  %530 = vmatprep.subr.bf16.mxu0 %v591_v5  ;;  %v599_v13 = vld [vmem:[%s790_s2 + $0x58] sm:$0xff]   ;;  %v603_v17 = vld [vmem:[%s790_s2 + $0x60] sm:$0xff]   ;;  %v607_v21 = vld [vmem:[%s790_s2 + $0x68] sm:$0xff]  }
   0x6   :  { %558 = vmatprep.subr.bf16.mxu1 %v592_v6  ;;  %v600_v14 = vld [vmem:[%s790_s2 + $0xd8] sm:$0xff]   ;;  %v604_v18 = vld [vmem:[%s790_s2 + $0xe0] sm:$0xff]   ;;  %v608_v22 = vld [vmem:[%s790_s2 + $0xe8] sm:$0xff]  }
   0x7   :  { %v601_v15 = vld [vmem:[%s790_s2 + $0x18] sm:$0xff]   ;;  %v605_v19 = vld [vmem:[%s790_s2 + $0x20] sm:$0xff]   ;;  %v609_v23 = vld [vmem:[%s790_s2 + $0x28] sm:$0xff]  }
   0x8   :  { %531 = vmatpush3.bf16.msra.mxu0 %v593_v7  ;;  %v602_v16 = vld [vmem:[%s790_s2 + $0x98] sm:$0xff]   ;;  %v606_v20 = vld [vmem:[%s790_s2 + $0xa0] sm:$0xff]   ;;  %v610_v24 = vld [vmem:[%s790_s2 + $0xa8] sm:$0xff]  }
   0x9   :  { %559 = vmatpush3.bf16.msra.mxu1 %v594_v8  ;;  %532 = vmatprep.subr.bf16.mxu0 %v595_v9  ;;  %v611_v25 = vld [vmem:[%s790_s2 + $0x70] sm:$0xff]   ;;  %v615_v29 = vld [vmem:[%s790_s2 + $0x78] sm:$0xff]   ;;  %v87_v39 = vld [vmem:[%s792_s1] sm:$0xff] }
   0xa   :  { %560 = vmatprep.subr.bf16.mxu1 %v596_v10  ;;  %v612_v26 = vld [vmem:[%s790_s2 + $0xf0] sm:$0xff]   ;;  %v616_v30 = vld [vmem:[%s790_s2 + $0xf8] sm:$0xff]   ;;  %93 = vperm.xlu0 %585, %v87_v39   ;;  %v88_v41 = vld [vmem:[%s792_s1 + $0x8] sm:$0xff] }
   0xb   :  { %v613_v27 = vld [vmem:[%s790_s2 + $0x30] sm:$0xff]   ;;  %v617_v31 = vld [vmem:[%s790_s2 + $0x38] sm:$0xff]  }
   0xc   :  { %533 = vmatpush3.bf16.msra.mxu0 %v597_v11  ;;  %v614_v28 = vld [vmem:[%s790_s2 + $0xb0] sm:$0xff]   ;;  %v618_v32 = vld [vmem:[%s790_s2 + $0xb8] sm:$0xff]  }
   0xd   :  { %561 = vmatpush3.bf16.msra.mxu1 %v598_v12  ;;  %534 = vmatprep.subr.bf16.mxu0 %v599_v13  ;;  %v619_v33 = vld [vmem:[%s791_s0] ss:$16 sps:$4 sm:$0xff]   ;;  %v621_v34 = vld [vmem:[%s791_s0 + $0x4] ss:$16 sps:$4 sm:$0xff]   ;;  %v622_v35 = vld [vmem:[%s791_s0 + $0x8] ss:$16 sps:$4 sm:$0xff]  }
   0xe   :  { %562 = vmatprep.subr.bf16.mxu1 %v600_v14  ;;  %v624_v36 = vld [vmem:[%s791_s0 + $0xc] ss:$16 sps:$4 sm:$0xff]   ;;  %375 = vmatprep.mubr.bf16.mxu0 %v621_v34  ;;  %v625_v37 = vld [vmem:[%s791_s0 + $0x24] ss:$16 sps:$4 sm:$0xff]   ;;  %v629_v42 = vld [vmem:[%s791_s0 + $0x20] ss:$16 sps:$4 sm:$0xff]  }
   0xf   :  { %424 = vmatprep.mubr.bf16.mxu1 %v624_v36  ;;  %v627_v38 = vld [vmem:[%s791_s0 + $0x2c] ss:$16 sps:$4 sm:$0xff]   ;;  %v89_v40 = vld [vmem:[%s792_s1 + $0x10] sm:$0xff]  ;;  %v630_v44 = vld [vmem:[%s791_s0 + $0x28] ss:$16 sps:$4 sm:$0xff]   ;;  %98 = vperm.xlu0 %585, %v88_v41  }
  0x10   :  { %535 = vmatpush3.bf16.msra.mxu0 %v601_v15  ;;  %103 = vperm.xlu1 %586, %v89_v40   ;;  %v90_v43 = vld [vmem:[%s792_s1 + $0x18] sm:$0xff] }
  0x11   :  { %563 = vmatpush3.bf16.msra.mxu1 %v602_v16  ;;  %536 = vmatprep.subr.bf16.mxu0 %v603_v17 }
  0x12   :  { %564 = vmatprep.subr.bf16.mxu1 %v604_v18 }
  0x14   :  { %537 = vmatpush3.bf16.msra.mxu0 %v605_v19  ;;  %108 = vperm.xlu1 %586, %v90_v43  }
  0x15   :  { %565 = vmatpush3.bf16.msra.mxu1 %v606_v20  ;;  %538 = vmatprep.subr.bf16.mxu0 %v607_v21 }
  0x16   :  { %566 = vmatprep.subr.bf16.mxu1 %v608_v22 }
  0x18   :  { %539 = vmatpush3.bf16.msra.mxu0 %v609_v23 }
  0x19   :  { %567 = vmatpush3.bf16.msra.mxu1 %v610_v24  ;;  %540 = vmatprep.subr.bf16.mxu0 %v611_v25 }
  0x1a   :  { %568 = vmatprep.subr.bf16.mxu1 %v612_v26 }
  0x1c   :  { %541 = vmatpush3.bf16.msra.mxu0 %v613_v27 }
  0x1d   :  { %569 = vmatpush3.bf16.msra.mxu1 %v614_v28  ;;  %542 = vmatprep.subr.bf16.mxu0 %v615_v29 }
  0x1e   :  { %570 = vmatprep.subr.bf16.mxu1 %v616_v30 }
  0x20   :  { %543 = vmatpush3.bf16.msra.mxu0 %v617_v31 }
  0x21   :  { %571 = vmatpush3.bf16.msra.mxu1 %v618_v32 }
  0x23   :  { %376 = vmatmul.mubr.bf16.vlgmr.msra.gmra.mrb[0].mxu0 %v619_v33 }
  0x24   :  { %425 = vmatmul.mubr.bf16.vlgmr.msra.gmra.mrb[0].mxu1 %v622_v35  ;;  %383 = vmatprep.mubr.bf16.mxu0 %v625_v37 }
  0x25   :  { %432 = vmatprep.mubr.bf16.mxu1 %v627_v38 }
  0x2b   :  { %384 = vmatmul.mubr.bf16.gmra.mrb[4].mxu0 %v629_v42 }
  0x2c   :  { %433 = vmatmul.mubr.bf16.gmra.mrb[4].mxu1 %v630_v44 }
  0x89   :  { %v94_v45 = vpop.permute.xlu0 %93 }
  0x8e   :  { %v99_v47 = vpop.permute.xlu0 %98 }
  0x8f   :  { %v104_v62 = vpop.permute.xlu1 %103 }
  0x93   :  { %v109_v15 = vpop.permute.xlu1 %108 }
  0xf6   :  { %v544_v46 = vpop.f32.mrb[0].mxu0 }
  0xf7   :  { %v572_v48 = vpop.f32.mrb[0].mxu1  ;;  %v545_v49 = vpop.f32.mrb[1].mxu0 }
  0xf8   :  { %v546_v50 = vadd.f32 %v545_v49, %v544_v46  ;;  %v573_v51 = vpop.f32.mrb[1].mxu1  ;;  %v547_v52 = vpop.f32.mrb[2].mxu0 }
  0xf9   :  { %v574_v53 = vadd.f32 %v573_v51, %v572_v48  ;;  %v575_v54 = vpop.f32.mrb[2].mxu1  ;;  %v548_v55 = vpop.f32.mrb[3].mxu0 }
  0xfa   :  { %v378_v56 = vadd.f32 %v546_v50, %v94_v45  ;;  %v549_v57 = vadd.f32 %v548_v55, %v547_v52  ;;  %v576_v58 = vpop.f32.mrb[3].mxu1 }
  0xfb   :  { %v577_v59 = vadd.f32 %v576_v58, %v575_v54 }
  0xfc   :  { %v427_v60 = vadd.f32 %v574_v53, %v378_v56  ;;  %v381_v61 = vadd.f32 %v549_v57, %v99_v47 }
  0xfe   :  { %v430_v63 = vadd.f32 %v577_v59, %v381_v61  ;;  %v550_v0 = vpop.f32.mrb[4].mxu0  ;;  %v441_v3 = vmax.f32 %v427_v60, 0.0 }
  0xff   :  { %v578_v1 = vpop.f32.mrb[4].mxu1  ;;  %v551_v2 = vpop.f32.mrb[5].mxu0 }
 0x100   :  { %v442_v4 = vmax.f32 %v430_v63, 0.0  ;;  %v552_v5 = vadd.f32 %v551_v2, %v550_v0  ;;  %v579_v6 = vpop.f32.mrb[5].mxu1  ;;  %v553_v7 = vpop.f32.mrb[6].mxu0 }
 0x101   :  { %v580_v8 = vadd.f32 %v579_v6, %v578_v1  ;;  %v581_v9 = vpop.f32.mrb[6].mxu1  ;;  %v554_v10 = vpop.f32.mrb[7].mxu0 }
 0x102   :  { %v520_v11 = vpack.c.bf16 %v442_v4, %v441_v3  ;;  %v386_v12 = vadd.f32 %v552_v5, %v104_v62  ;;  %v555_v13 = vadd.f32 %v554_v10, %v553_v7  ;;  %v582_v14 = vpop.f32.mrb[7].mxu1 }
 0x103   :  { %v583_v16 = vadd.f32 %v582_v14, %v581_v9 }
 0x104   :  { %521 = vst [vmem:[%s793_s3] sm:$0xff] %v520_v11   ;;  %v435_v17 = vadd.f32 %v580_v8, %v386_v12  ;;  %v389_v18 = vadd.f32 %v555_v13, %v109_v15 }
 0x106   :  { %v438_v19 = vadd.f32 %v583_v16, %v389_v18  ;;  %v443_v20 = vmax.f32 %v435_v17, 0.0 }
 0x108   :  { %v444_v21 = vmax.f32 %v438_v19, 0.0 }
 0x10a   :  { %v525_v22 = vpack.c.bf16 %v444_v21, %v443_v20 }
 0x10c   :  { %527 = vst [vmem:[%s793_s3 + $0x8] sm:$0xff] %v525_v22  }

// kernel: conv2d_forward.6
= control target key start
LH: loop header
LB: loop body
LE: loop exit
PB: predicated region body
PF: predicated region fallthrough
CT: control target
= control target key end

     0   :  { %v1377_v1 = vmov 0   ;;  %s1704_s2 = inlined_call_operand.vmem [shape: bf16[896,128], index: 2, kind: input, shape index: {}]   ;;  %s1705_s0 = inlined_call_operand.vmem [shape: bf16[64,896], index: 0, kind: input, shape index: {}]   ;;  %s1706_s1 = inlined_call_operand.vmem [shape: f32[64,1], index: 1, kind: input, shape index: {}]   ;;  %s1707_s3 = inlined_call_operand.vmem [shape: bf16[64,128], index: 3, kind: output, shape index: {}]  }
   0x1   :  { %v1281_v0 = vld [vmem:[%s1704_s2 + $0x40] sm:$0xff]   ;;  %1279 = vset.pattern.permute.xlu0 %v1377_v1  ;;  %1280 = vset.pattern.permute.xlu1 %v1377_v1  ;;  %v1285_v5 = vld [vmem:[%s1704_s2 + $0x48] sm:$0xff]   ;;  %v1289_v9 = vld [vmem:[%s1704_s2 + $0x50] sm:$0xff]  }
   0x2   :  { %v1282_v2 = vld [vmem:[%s1704_s2] sm:$0xff]   ;;  %1122 = vmatprep.subr.bf16.mxu0 %v1281_v0  ;;  %v1286_v6 = vld [vmem:[%s1704_s2 + $0x8] sm:$0xff]   ;;  %v1290_v10 = vld [vmem:[%s1704_s2 + $0x10] sm:$0xff]  }
   0x3   :  { %v1283_v3 = vld [vmem:[%s1704_s2 + $0xc0] sm:$0xff]   ;;  %1123 = vmatpush3.bf16.msra.mxu0 %v1282_v2  ;;  %v1287_v7 = vld [vmem:[%s1704_s2 + $0xc8] sm:$0xff]   ;;  %v1291_v11 = vld [vmem:[%s1704_s2 + $0xd0] sm:$0xff]  }
   0x4   :  { %v1284_v4 = vld [vmem:[%s1704_s2 + $0x80] sm:$0xff]   ;;  %1162 = vmatprep.subr.bf16.mxu1 %v1283_v3  ;;  %1124 = vmatprep.subr.bf16.mxu0 %v1285_v5  ;;  %v1288_v8 = vld [vmem:[%s1704_s2 + $0x88] sm:$0xff]   ;;  %v1292_v12 = vld [vmem:[%s1704_s2 + $0x90] sm:$0xff]  }
   0x5   :  { %1163 = vmatpush3.bf16.msra.mxu1 %v1284_v4  ;;  %v1293_v13 = vld [vmem:[%s1704_s2 + $0x58] sm:$0xff]   ;;  %v1297_v17 = vld [vmem:[%s1704_s2 + $0x60] sm:$0xff]   ;;  %v1301_v21 = vld [vmem:[%s1704_s2 + $0x68] sm:$0xff]  }
   0x6   :  { %1164 = vmatprep.subr.bf16.mxu1 %v1287_v7  ;;  %v1294_v14 = vld [vmem:[%s1704_s2 + $0x18] sm:$0xff]   ;;  %v1298_v18 = vld [vmem:[%s1704_s2 + $0x20] sm:$0xff]   ;;  %v1302_v22 = vld [vmem:[%s1704_s2 + $0x28] sm:$0xff]  }
   0x7   :  { %1125 = vmatpush3.bf16.msra.mxu0 %v1286_v6  ;;  %v1295_v15 = vld [vmem:[%s1704_s2 + $0xd8] sm:$0xff]   ;;  %v1299_v19 = vld [vmem:[%s1704_s2 + $0xe0] sm:$0xff]   ;;  %v1303_v23 = vld [vmem:[%s1704_s2 + $0xe8] sm:$0xff]  }
   0x8   :  { %1126 = vmatprep.subr.bf16.mxu0 %v1289_v9  ;;  %v1296_v16 = vld [vmem:[%s1704_s2 + $0x98] sm:$0xff]   ;;  %v1300_v20 = vld [vmem:[%s1704_s2 + $0xa0] sm:$0xff]   ;;  %v1304_v24 = vld [vmem:[%s1704_s2 + $0xa8] sm:$0xff]  }
   0x9   :  { %1165 = vmatpush3.bf16.msra.mxu1 %v1288_v8  ;;  %v1305_v25 = vld [vmem:[%s1704_s2 + $0x70] sm:$0xff]   ;;  %v1309_v29 = vld [vmem:[%s1704_s2 + $0x78] sm:$0xff]   ;;  %v1314_v33 = vld [vmem:[%s1705_s0 + $0x4] ss:$28 sps:$4 sm:$0xff]  }
   0xa   :  { %1166 = vmatprep.subr.bf16.mxu1 %v1291_v11  ;;  %v1306_v26 = vld [vmem:[%s1704_s2 + $0x30] sm:$0xff]   ;;  %v1310_v30 = vld [vmem:[%s1704_s2 + $0x38] sm:$0xff]   ;;  %719 = vmatprep.mubr.bf16.mxu0 %v1314_v33  ;;  %v1316_v35 = vld [vmem:[%s1704_s2 + $0x140] sm:$0xff]  }
   0xb   :  { %1127 = vmatpush3.bf16.msra.mxu0 %v1290_v10  ;;  %v1307_v27 = vld [vmem:[%s1704_s2 + $0xf0] sm:$0xff]   ;;  %v1311_v31 = vld [vmem:[%s1704_s2 + $0xf8] sm:$0xff]   ;;  %v1317_v36 = vld [vmem:[%s1705_s0 + $0x8] ss:$28 sps:$4 sm:$0xff]  }
   0xc   :  { %1128 = vmatprep.subr.bf16.mxu0 %v1293_v13  ;;  %v1308_v28 = vld [vmem:[%s1704_s2 + $0xb0] sm:$0xff]   ;;  %v1312_v32 = vld [vmem:[%s1705_s0] ss:$28 sps:$4 sm:$0xff]   ;;  %v1319_v37 = vld [vmem:[%s1705_s0 + $0xc] ss:$28 sps:$4 sm:$0xff]  }
   0xd   :  { %1167 = vmatpush3.bf16.msra.mxu1 %v1292_v12  ;;  %v1315_v34 = vld [vmem:[%s1704_s2 + $0xb8] sm:$0xff]   ;;  %v1320_v38 = vld [vmem:[%s1704_s2 + $0x100] sm:$0xff]   ;;  %784 = vmatprep.mubr.bf16.mxu1 %v1319_v37  ;;  %v1321_v39 = vld [vmem:[%s1704_s2 + $0x148] sm:$0xff]  }
   0xe   :  { %1168 = vmatprep.subr.bf16.mxu1 %v1295_v15  ;;  %v1322_v40 = vld [vmem:[%s1704_s2 + $0x180] sm:$0xff]   ;;  %v1323_v41 = vld [vmem:[%s1704_s2 + $0x108] sm:$0xff]   ;;  %v1324_v42 = vld [vmem:[%s1705_s0 + $0x3c] ss:$28 sps:$4 sm:$0xff]  }
   0xf   :  { %1129 = vmatpush3.bf16.msra.mxu0 %v1294_v14  ;;  %v1326_v43 = vld [vmem:[%s1705_s0 + $0x38] ss:$28 sps:$4 sm:$0xff]   ;;  %v1328_v45 = vld [vmem:[%s1704_s2 + $0x188] sm:$0xff]   ;;  %v1329_v46 = vld [vmem:[%s1705_s0 + $0x44] ss:$28 sps:$4 sm:$0xff]  }
  0x10   :  { %1130 = vmatprep.subr.bf16.mxu0 %v1297_v17  ;;  %v1327_v44 = vld [vmem:[%s1704_s2 + $0x150] sm:$0xff]   ;;  %v1332_v48 = vld [vmem:[%s1705_s0 + $0x40] ss:$28 sps:$4 sm:$0xff]   ;;  %v1345_v59 = vld [vmem:[%s1704_s2 + $0x168] sm:$0xff]  }
  0x11   :  { %1169 = vmatpush3.bf16.msra.mxu1 %v1296_v16  ;;  %v1331_v47 = vld [vmem:[%s1704_s2 + $0x110] sm:$0xff]   ;;  %v1333_v49 = vld [vmem:[%s1704_s2 + $0x158] sm:$0xff]   ;;  %v1339_v54 = vld [vmem:[%s1704_s2 + $0x160] sm:$0xff]  }
  0x12   :  { %1170 = vmatprep.subr.bf16.mxu1 %v1299_v19  ;;  %v1334_v50 = vld [vmem:[%s1704_s2 + $0x190] sm:$0xff]   ;;  %v1335_v51 = vld [vmem:[%s1704_s2 + $0x118] sm:$0xff]   ;;  %v1343_v57 = vld [vmem:[%s1704_s2 + $0x120] sm:$0xff]  }
  0x13   :  { %1131 = vmatpush3.bf16.msra.mxu0 %v1298_v18  ;;  %v1336_v52 = vld [vmem:[%s1705_s0 + $0x74] ss:$28 sps:$4 sm:$0xff]   ;;  %v1340_v55 = vld [vmem:[%s1704_s2 + $0x198] sm:$0xff]   ;;  %v1346_v60 = vld [vmem:[%s1704_s2 + $0x1a0] sm:$0xff]  }
  0x14   :  { %1132 = vmatprep.subr.bf16.mxu0 %v1301_v21  ;;  %v1338_v53 = vld [vmem:[%s1705_s0 + $0x70] ss:$28 sps:$4 sm:$0xff]   ;;  %v1341_v56 = vld [vmem:[%s1705_s0 + $0x7c] ss:$28 sps:$4 sm:$0xff]   ;;  %v1350_v63 = vld [vmem:[%s1705_s0 + $0xa8] ss:$28 sps:$4 sm:$0xff]  }
  0x15   :  { %1171 = vmatpush3.bf16.msra.mxu1 %v1300_v20  ;;  %v1344_v58 = vld [vmem:[%s1705_s0 + $0x78] ss:$28 sps:$4 sm:$0xff]   ;;  %v1347_v61 = vld [vmem:[%s1704_s2 + $0x128] sm:$0xff]   ;;  %v1369_v16 = vld [vmem:[%s1705_s0 + $0x84] ss:$28 sps:$4 sm:$0xff]  }
  0x16   :  { %1172 = vmatprep.subr.bf16.mxu1 %v1303_v23  ;;  %v1348_v62 = vld [vmem:[%s1705_s0 + $0xac] ss:$28 sps:$4 sm:$0xff]   ;;  %v1351_v0 = vld [vmem:[%s1704_s2 + $0x170] sm:$0xff]   ;;  %v1357_v5 = vld [vmem:[%s1704_s2 + $0x178] sm:$0xff]  }
  0x17   :  { %1133 = vmatpush3.bf16.msra.mxu0 %v1302_v22  ;;  %v1352_v1 = vld [vmem:[%s1704_s2 + $0x1a8] sm:$0xff]   ;;  %v1353_v2 = vld [vmem:[%s1705_s0 + $0xb4] ss:$28 sps:$4 sm:$0xff]   ;;  %v1359_v7 = vld [vmem:[%s1704_s2 + $0x138] sm:$0xff]  }
  0x18   :  { %1134 = vmatprep.subr.bf16.mxu0 %v1305_v25  ;;  %v1355_v3 = vld [vmem:[%s1704_s2 + $0x130] sm:$0xff]   ;;  %v1363_v10 = vld [vmem:[%s1704_s2 + $0x1b8] sm:$0xff]   ;;  %v1366_v13 = vld [vmem:[%s1705_s0 + $0x4c] ss:$28 sps:$4 sm:$0xff]  }
  0x19   :  { %1173 = vmatpush3.bf16.msra.mxu1 %v1304_v24  ;;  %v1356_v4 = vld [vmem:[%s1705_s0 + $0xb0] ss:$28 sps:$4 sm:$0xff]   ;;  %v1364_v11 = vld [vmem:[%s1705_s0 + $0x18] ss:$28 sps:$4 sm:$0xff]   ;;  %v1372_v14 = vld [vmem:[%s1705_s0 + $0x88] ss:$28 sps:$4 sm:$0xff]  }
  0x1a   :  { %1174 = vmatprep.subr.bf16.mxu1 %v1307_v27  ;;  %v1358_v6 = vld [vmem:[%s1704_s2 + $0x1b0] sm:$0xff]   ;;  %v1368_v15 = vld [vmem:[%s1705_s0 + $0x48] ss:$28 sps:$4 sm:$0xff]   ;;  %v1373_v19 = vld [vmem:[%s1705_s0 + $0xc0] ss:$28 sps:$4 sm:$0xff]  }
  0x1b   :  { %1135 = vmatpush3.bf16.msra.mxu0 %v1306_v26  ;;  %v1360_v8 = vld [vmem:[%s1705_s0 + $0x10] ss:$28 sps:$4 sm:$0xff]   ;;  %v159_v17 = vld [vmem:[%s1706_s1] sm:$0xff]  ;;  %v162_v21 = vld [vmem:[%s1706_s1 + $0x18] sm:$0xff] }
  0x1c   :  { %1136 = vmatprep.subr.bf16.mxu0 %v1309_v29  ;;  %v1362_v9 = vld [vmem:[%s1705_s0 + $0x14] ss:$28 sps:$4 sm:$0xff]   ;;  %169 = vperm.xlu0 %1279, %v159_v17   ;;  %v160_v20 = vld [vmem:[%s1706_s1 + $0x8] sm:$0xff]  ;;  %v163_v22 = vld [vmem:[%s1706_s1 + $0x20] sm:$0xff] }
  0x1d   :  { %1175 = vmatpush3.bf16.msra.mxu1 %v1308_v28  ;;  %v1365_v12 = vld [vmem:[%s1705_s0 + $0x50] ss:$28 sps:$4 sm:$0xff]   ;;  %v1371_v24 = vld [vmem:[%s1705_s0 + $0x80] ss:$28 sps:$4 sm:$0xff]   ;;  %v1376_v28 = vld [vmem:[%s1705_s0 + $0xb8] ss:$28 sps:$4 sm:$0xff]  }
  0x1e   :  { %1176 = vmatprep.subr.bf16.mxu1 %v1311_v31  ;;  %v161_v18 = vld [vmem:[%s1706_s1 + $0x10] sm:$0xff]  ;;  %v164_v23 = vld [vmem:[%s1706_s1 + $0x28] sm:$0xff]  ;;  %v1374_v25 = vld [vmem:[%s1705_s0 + $0xbc] ss:$28 sps:$4 sm:$0xff]  }
  0x1f   :  { %1137 = vmatpush3.bf16.msra.mxu0 %v1310_v30  ;;  %179 = vperm.xlu1 %1280, %v161_v18   ;;  %v165_v26 = vld [vmem:[%s1706_s1 + $0x30] sm:$0xff]  ;;  %v166_v27 = vld [vmem:[%s1706_s1 + $0x38] sm:$0xff] }
  0x20   :  { %1202 = vmatprep.subr.bf16.mxu0 %v1316_v35  ;;  %174 = vperm.xlu0 %1279, %v160_v20  }
  0x21   :  { %1177 = vmatpush3.bf16.msra.mxu1 %v1315_v34 }
  0x22   :  { %720 = vmatmul.mubr.bf16.vlgmr.msra.gmra.mrb[0].mxu0 %v1312_v32  ;;  %1254 = vmatprep.subr.bf16.mxu1 %v1322_v40 }
  0x23   :  { %1203 = vmatpush3.bf16.msra.mxu0 %v1320_v38  ;;  %727 = vmatprep.mubr.bf16.mxu0 %v1324_v42 }
  0x24   :  { %785 = vmatmul.mubr.bf16.vlgmr.msra.gmra.mrb[0].mxu1 %v1317_v36  ;;  %1204 = vmatprep.subr.bf16.mxu0 %v1321_v39 }
  0x25   :  { %1255 = vmatpush3.bf16.msra.mxu1 %v1322_v40  ;;  %792 = vmatprep.mubr.bf16.mxu1 %v1329_v46 }
  0x26   :  { %1256 = vmatprep.subr.bf16.mxu1 %v1328_v45  ;;  %184 = vperm.xlu1 %1280, %v162_v21  }
  0x27   :  { %1205 = vmatpush3.bf16.msra.mxu0 %v1323_v41  ;;  %189 = vperm.xlu0 %1279, %v163_v22  }
  0x28   :  { %1206 = vmatprep.subr.bf16.mxu0 %v1327_v44 }
  0x29   :  { %1257 = vmatpush3.bf16.msra.mxu1 %v1328_v45 }
  0x2a   :  { %728 = vmatmul.mubr.bf16.gmra.mrb[4].mxu0 %v1326_v43  ;;  %1258 = vmatprep.subr.bf16.mxu1 %v1334_v50 }
  0x2b   :  { %1207 = vmatpush3.bf16.msra.mxu0 %v1331_v47  ;;  %735 = vmatprep.mubr.bf16.mxu0 %v1336_v52 }
  0x2c   :  { %793 = vmatmul.mubr.bf16.gmra.mrb[4].mxu1 %v1332_v48  ;;  %1208 = vmatprep.subr.bf16.mxu0 %v1333_v49 }
  0x2d   :  { %1259 = vmatpush3.bf16.msra.mxu1 %v1334_v50  ;;  %800 = vmatprep.mubr.bf16.mxu1 %v1341_v56 }
  0x2e   :  { %1260 = vmatprep.subr.bf16.mxu1 %v1340_v55  ;;  %194 = vperm.xlu1 %1280, %v164_v23  }
  0x2f   :  { %1209 = vmatpush3.bf16.msra.mxu0 %v1335_v51  ;;  %199 = vperm.xlu0 %1279, %v165_v26  }
  0x30   :  { %1210 = vmatprep.subr.bf16.mxu0 %v1339_v54 }
  0x31   :  { %1261 = vmatpush3.bf16.msra.mxu1 %v1340_v55 }
  0x32   :  { %736 = vmatmul.mubr.bf16.gmra.mrb[8].mxu0 %v1338_v53  ;;  %1262 = vmatprep.subr.bf16.mxu1 %v1346_v60 }
  0x33   :  { %1211 = vmatpush3.bf16.msra.mxu0 %v1343_v57  ;;  %743 = vmatprep.mubr.bf16.mxu0 %v1348_v62 }
  0x34   :  { %801 = vmatmul.mubr.bf16.gmra.mrb[8].mxu1 %v1344_v58  ;;  %1212 = vmatprep.subr.bf16.mxu0 %v1345_v59 }
  0x35   :  { %1263 = vmatpush3.bf16.msra.mxu1 %v1346_v60  ;;  %808 = vmatprep.mubr.bf16.mxu1 %v1353_v2 }
  0x36   :  { %1264 = vmatprep.subr.bf16.mxu1 %v1352_v1  ;;  %204 = vperm.xlu1 %1280, %v166_v27  }
  0x37   :  { %1213 = vmatpush3.bf16.msra.mxu0 %v1347_v61 }
  0x38   :  { %1214 = vmatprep.subr.bf16.mxu0 %v1351_v0 }
  0x39   :  { %1265 = vmatpush3.bf16.msra.mxu1 %v1352_v1 }
  0x3a   :  { %744 = vmatmul.mubr.bf16.gmra.mrb[12].mxu0 %v1350_v63  ;;  %1266 = vmatprep.subr.bf16.mxu1 %v1358_v6 }
  0x3b   :  { %1215 = vmatpush3.bf16.msra.mxu0 %v1355_v3  ;;  %849 = vmatprep.mubr.bf16.mxu0 %v1362_v9 }
  0x3c   :  { %809 = vmatmul.mubr.bf16.gmra.mrb[12].mxu1 %v1356_v4  ;;  %1216 = vmatprep.subr.bf16.mxu0 %v1357_v5 }
  0x3d   :  { %1267 = vmatpush3.bf16.msra.mxu1 %v1358_v6  ;;  %1270 = vmatprep.mubr.bf16.mxu1 %v1364_v11 }
  0x3e   :  { %1268 = vmatprep.subr.bf16.mxu1 %v1363_v10 }
  0x3f   :  { %1217 = vmatpush3.bf16.msra.mxu0 %v1359_v7 }
  0x41   :  { %1269 = vmatpush3.bf16.msra.mxu1 %v1363_v10 }
  0x42   :  { %850 = vmatmul.mubr.bf16.vlgmr.msra.gmra.mrb[16].mxu0 %v1360_v8 }
  0x43   :  { %857 = vmatprep.mubr.bf16.mxu0 %v1366_v13 }
  0x44   :  { %1271 = vmatmul.mubr.bf16.vlgmr.msra.gmra.mrb[16].mxu1 %v1365_v12 }
  0x45   :  { %1274 = vmatprep.mubr.bf16.mxu1 %v1372_v14 }
  0x4a   :  { %858 = vmatmul.mubr.bf16.gmra.mrb[20].mxu0 %v1368_v15 }
  0x4b   :  { %865 = vmatprep.mubr.bf16.mxu0 %v1369_v16 }
  0x4c   :  { %1275 = vmatmul.mubr.bf16.gmra.mrb[20].mxu1 %v1373_v19 }
  0x52   :  { %866 = vmatmul.mubr.bf16.gmra.mrb[24].mxu0 %v1371_v24 }
  0x53   :  { %873 = vmatprep.mubr.bf16.mxu0 %v1374_v25 }
  0x5a   :  { %874 = vmatmul.mubr.bf16.gmra.mrb[28].mxu0 %v1376_v28 }
  0x9b   :  { %v170_v29 = vpop.permute.xlu0 %169 }
  0x9e   :  { %v180_v42 = vpop.permute.xlu1 %179 }
  0x9f   :  { %v175_v34 = vpop.permute.xlu0 %174 }
  0xa5   :  { %v185_v53 = vpop.permute.xlu1 %184 }
  0xa6   :  { %v190_v3 = vpop.permute.xlu0 %189 }
  0xad   :  { %v195_v6 = vpop.permute.xlu1 %194 }
  0xae   :  { %v200_v21 = vpop.permute.xlu0 %199 }
  0xb5   :  { %v205_v25 = vpop.permute.xlu1 %204 }
  0xf5   :  { %v1138_v30 = vpop.f32.mrb[0].mxu0 }
  0xf6   :  { %v1139_v31 = vpop.f32.mrb[1].mxu0 }
  0xf7   :  { %v1140_v32 = vadd.f32 %v1139_v31, %v1138_v30  ;;  %v1141_v33 = vpop.f32.mrb[2].mxu0  ;;  %v1178_v35 = vpop.f32.mrb[0].mxu1 }
  0xf8   :  { %v1142_v36 = vpop.f32.mrb[3].mxu0  ;;  %v1179_v39 = vpop.f32.mrb[1].mxu1 }
  0xf9   :  { %v722_v37 = vadd.f32 %v1140_v32, %v170_v29  ;;  %v1143_v38 = vadd.f32 %v1142_v36, %v1141_v33  ;;  %v1180_v40 = vadd.f32 %v1179_v39, %v1178_v35  ;;  %v1181_v41 = vpop.f32.mrb[2].mxu1 }
  0xfa   :  { %v1182_v44 = vpop.f32.mrb[3].mxu1 }
  0xfb   :  { %v725_v43 = vadd.f32 %v1143_v38, %v175_v34  ;;  %v1674_v45 = vadd.f32 %v1180_v40, %v722_v37  ;;  %v1183_v46 = vadd.f32 %v1182_v44, %v1181_v41 }
  0xfd   :  { %v1144_v47 = vpop.f32.mrb[4].mxu0  ;;  %v1676_v48 = vadd.f32 %v1183_v46, %v725_v43 }
  0xfe   :  { %v1145_v49 = vpop.f32.mrb[5].mxu0 }
  0xff   :  { %v1146_v50 = vadd.f32 %v1145_v49, %v1144_v47  ;;  %v1147_v51 = vpop.f32.mrb[6].mxu0  ;;  %v1184_v55 = vpop.f32.mrb[4].mxu1 }
 0x100   :  { %v1148_v52 = vpop.f32.mrb[7].mxu0  ;;  %v1185_v57 = vpop.f32.mrb[5].mxu1 }
 0x101   :  { %v730_v54 = vadd.f32 %v1146_v50, %v180_v42  ;;  %v1149_v56 = vadd.f32 %v1148_v52, %v1147_v51  ;;  %v1186_v58 = vadd.f32 %v1185_v57, %v1184_v55  ;;  %v1187_v59 = vpop.f32.mrb[6].mxu1 }
 0x102   :  { %v1188_v61 = vpop.f32.mrb[7].mxu1 }
 0x103   :  { %v733_v60 = vadd.f32 %v1149_v56, %v185_v53  ;;  %v1678_v62 = vadd.f32 %v1186_v58, %v730_v54  ;;  %v1189_v63 = vadd.f32 %v1188_v61, %v1187_v59 }
 0x105   :  { %v1150_v0 = vpop.f32.mrb[8].mxu0  ;;  %v1680_v1 = vadd.f32 %v1189_v63, %v733_v60 }
 0x106   :  { %v1151_v2 = vpop.f32.mrb[9].mxu0 }
 0x107   :  { %v1152_v4 = vadd.f32 %v1151_v2, %v1150_v0  ;;  %v1153_v5 = vpop.f32.mrb[10].mxu0  ;;  %v1190_v7 = vpop.f32.mrb[8].mxu1 }
 0x108   :  { %v1154_v8 = vpop.f32.mrb[11].mxu0  ;;  %v1191_v11 = vpop.f32.mrb[9].mxu1 }
 0x109   :  { %v738_v9 = vadd.f32 %v1152_v4, %v190_v3  ;;  %v1155_v10 = vadd.f32 %v1154_v8, %v1153_v5  ;;  %v1192_v12 = vadd.f32 %v1191_v11, %v1190_v7  ;;  %v1193_v13 = vpop.f32.mrb[10].mxu1 }
 0x10a   :  { %v1194_v15 = vpop.f32.mrb[11].mxu1 }
 0x10b   :  { %v741_v14 = vadd.f32 %v1155_v10, %v195_v6  ;;  %v1682_v16 = vadd.f32 %v1192_v12, %v738_v9  ;;  %v1195_v17 = vadd.f32 %v1194_v15, %v1193_v13 }
 0x10d   :  { %v1156_v18 = vpop.f32.mrb[12].mxu0  ;;  %v1684_v19 = vadd.f32 %v1195_v17, %v741_v14 }
 0x10e   :  { %v1157_v20 = vpop.f32.mrb[13].mxu0 }
 0x10f   :  { %v1158_v22 = vadd.f32 %v1157_v20, %v1156_v18  ;;  %v1159_v23 = vpop.f32.mrb[14].mxu0  ;;  %v1196_v26 = vpop.f32.mrb[12].mxu1 }
 0x110   :  { %v1160_v24 = vpop.f32.mrb[15].mxu0  ;;  %v1197_v29 = vpop.f32.mrb[13].mxu1 }
 0x111   :  { %v746_v27 = vadd.f32 %v1158_v22, %v200_v21  ;;  %v1161_v28 = vadd.f32 %v1160_v24, %v1159_v23  ;;  %v1198_v30 = vadd.f32 %v1197_v29, %v1196_v26  ;;  %v1199_v31 = vpop.f32.mrb[14].mxu1 }
 0x112   :  { %v1200_v33 = vpop.f32.mrb[15].mxu1 }
 0x113   :  { %v749_v32 = vadd.f32 %v1161_v28, %v205_v25  ;;  %v811_v34 = vadd.f32 %v1198_v30, %v746_v27  ;;  %v1201_v35 = vadd.f32 %v1200_v33, %v1199_v31 }
 0x115   :  { %v814_v36 = vadd.f32 %v1201_v35, %v749_v32  ;;  %v1218_v37 = vpop.f32.mrb[16].mxu0 }
 0x116   :  { %v1219_v38 = vpop.f32.mrb[17].mxu0 }
 0x117   :  { %v1220_v39 = vadd.f32 %v1219_v38, %v1218_v37  ;;  %v1221_v40 = vpop.f32.mrb[18].mxu0  ;;  %v1272_v42 = vpop.f32.mrb[16].mxu1 }
 0x118   :  { %v1222_v41 = vpop.f32.mrb[19].mxu0  ;;  %v916_v46 = vpop.f32.mrb[17].mxu1 }
 0x119   :  { %v1223_v43 = vadd.f32 %v1222_v41, %v1221_v40  ;;  %v852_v44 = vadd.f32 %v1220_v39, %v1674_v45  ;;  %v1273_v47 = vpop.f32.mrb[18].mxu1 }
 0x11a   :  { %v919_v51 = vpop.f32.mrb[19].mxu1 }
 0x11b   :  { %v917_v49 = vadd.f32 %v916_v46, %v852_v44  ;;  %v855_v50 = vadd.f32 %v1223_v43, %v1676_v48 }
 0x11d   :  { %v920_v52 = vadd.f32 %v919_v51, %v855_v50  ;;  %v1224_v53 = vpop.f32.mrb[20].mxu0  ;;  %v947_v55 = vmax.f32 %v917_v49, 0.0 }
 0x11e   :  { %v1225_v54 = vpop.f32.mrb[21].mxu0 }
 0x11f   :  { %v948_v56 = vmax.f32 %v920_v52, 0.0  ;;  %v1226_v57 = vadd.f32 %v1225_v54, %v1224_v53  ;;  %v1227_v58 = vpop.f32.mrb[22].mxu0  ;;  %v1276_v60 = vpop.f32.mrb[20].mxu1 }
 0x120   :  { %v1228_v59 = vpop.f32.mrb[23].mxu0  ;;  %v932_v45 = vpop.f32.mrb[21].mxu1 }
 0x121   :  { %v1102_v61 = vpack.c.bf16 %v948_v56, %v947_v55  ;;  %v860_v63 = vadd.f32 %v1226_v57, %v1678_v62  ;;  %v1229_v0 = vadd.f32 %v1228_v59, %v1227_v58  ;;  %v1277_v2 = vpop.f32.mrb[22].mxu1 }
 0x122   :  { %v935_v4 = vpop.f32.mrb[23].mxu1 }
 0x123   :  { %1103 = vst [vmem:[%s1707_s3] sm:$0xff] %v1102_v61   ;;  %v925_v48 = vadd.f32 %v1272_v42, %v860_v63  ;;  %v863_v3 = vadd.f32 %v1229_v0, %v1680_v1 }
 0x125   :  { %v928_v5 = vadd.f32 %v1273_v47, %v863_v3  ;;  %v1230_v6 = vpop.f32.mrb[24].mxu0  ;;  %v949_v8 = vmax.f32 %v925_v48, 0.0 }
 0x126   :  { %v1231_v7 = vpop.f32.mrb[25].mxu0 }
 0x127   :  { %v950_v9 = vmax.f32 %v928_v5, 0.0  ;;  %v1232_v10 = vadd.f32 %v1231_v7, %v1230_v6  ;;  %v1233_v11 = vpop.f32.mrb[26].mxu0 }
 0x128   :  { %v1234_v12 = vpop.f32.mrb[27].mxu0 }
 0x129   :  { %v1107_v62 = vpack.c.bf16 %v950_v9, %v949_v8  ;;  %v1235_v13 = vadd.f32 %v1234_v12, %v1233_v11  ;;  %v868_v14 = vadd.f32 %v1232_v10, %v1682_v16 }
 0x12b   :  { %1119 = vst [vmem:[%s1707_s3 + $0x8] sm:$0xff] %v1107_v62   ;;  %v933_v15 = vadd.f32 %v932_v45, %v868_v14  ;;  %v871_v1 = vadd.f32 %v1235_v13, %v1684_v19 }
 0x12d   :  { %v936_v17 = vadd.f32 %v935_v4, %v871_v1  ;;  %v1236_v18 = vpop.f32.mrb[28].mxu0  ;;  %v951_v21 = vmax.f32 %v933_v15, 0.0 }
 0x12e   :  { %v1237_v20 = vpop.f32.mrb[29].mxu0 }
 0x12f   :  { %v952_v22 = vmax.f32 %v936_v17, 0.0  ;;  %v1238_v23 = vadd.f32 %v1237_v20, %v1236_v18  ;;  %v1239_v24 = vpop.f32.mrb[30].mxu0 }
 0x130   :  { %v1240_v25 = vpop.f32.mrb[31].mxu0 }
 0x131   :  { %v1112_v26 = vpack.c.bf16 %v952_v22, %v951_v21  ;;  %v876_v27 = vadd.f32 %v1238_v23, %v811_v34  ;;  %v1241_v28 = vadd.f32 %v1240_v25, %v1239_v24 }
 0x133   :  { %1120 = vst [vmem:[%s1707_s3 + $0x10] sm:$0xff] %v1112_v26   ;;  %v941_v16 = vadd.f32 %v1276_v60, %v876_v27  ;;  %v879_v29 = vadd.f32 %v1241_v28, %v814_v36 }
 0x135   :  { %v944_v30 = vadd.f32 %v1277_v2, %v879_v29  ;;  %v953_v31 = vmax.f32 %v941_v16, 0.0 }
 0x137   :  { %v954_v19 = vmax.f32 %v944_v30, 0.0 }
 0x139   :  { %v1117_v32 = vpack.c.bf16 %v954_v19, %v953_v31 }
 0x13b   :  { %1121 = vst [vmem:[%s1707_s3 + $0x18] sm:$0xff] %v1117_v32  }

// kernel: conv2d_forward.7
= control target key start
LH: loop header
LB: loop body
LE: loop exit
PB: predicated region body
PF: predicated region fallthrough
CT: control target
= control target key end

     0   :  { %v1624_v3 = vmov 0   ;;  %s2084_s1 = inlined_call_operand.vmem [shape: bf16[128,1024], index: 1, kind: input, shape index: {}]   ;;  %s2085_s0 = inlined_call_operand.vmem [shape: bf16[16,128], index: 0, kind: input, shape index: {}]   ;;  %s2086_s3 = inlined_call_operand.vmem [shape: bf16[1024,128], index: 3, kind: input, shape index: {}]   ;;  %s2087_s2 = inlined_call_operand.vmem [shape: f32[1,1024], index: 2, kind: input, shape index: {}]   ;;  %s2088_s4 = inlined_call_operand.vmem [shape: f32[1,128], index: 4, kind: input, shape index: {}]   ;;  %s2089_s5 = inlined_call_operand.vmem [shape: f32[16,128], index: 5, kind: output, shape index: {}]  }
   0x1   :  { %v23_v0 = vld [vmem:[%s2084_s1] sm:$0xff]  ;;  %v24_v2 = vld [vmem:[%s2084_s1 + $0x8] sm:$0xff]  ;;  %487 = vmatprep.mubr.bf16.mxu0 %v1624_v3  ;;  %530 = vmatprep.mubr.bf16.mxu1 %v1624_v3  ;;  %v25_v60 = vld [vmem:[%s2084_s1 + $0x10] sm:$0xff] }
   0x2   :  { %v27_v1 = vld [vmem:[%s2084_s1 + $0x20] sm:$0xff]  ;;  %v28_v5 = vld [vmem:[%s2084_s1 + $0x28] sm:$0xff]  ;;  %v29_v63 = vld [vmem:[%s2084_s1 + $0x30] sm:$0xff] }
   0x3   :  { %v1342_v4 = vcombine.high %v23_v0, %v27_v1  ;;  %v1341_v6 = vcombine.low %v23_v0, %v27_v1  ;;  %v31_v7 = vld [vmem:[%s2084_s1 + $0x40] sm:$0xff]  ;;  %v1344_v9 = vcombine.high %v24_v2, %v28_v5  ;;  %v1343_v10 = vcombine.low %v24_v2, %v28_v5  ;;  %v32_v12 = vld [vmem:[%s2084_s1 + $0x48] sm:$0xff]  ;;  %v26_v1 = vld [vmem:[%s2084_s1 + $0x18] sm:$0xff] }
   0x4   :  { %v35_v8 = vld [vmem:[%s2084_s1 + $0x60] sm:$0xff]  ;;  %v36_v13 = vld [vmem:[%s2084_s1 + $0x68] sm:$0xff]  ;;  %v30_v2 = vld [vmem:[%s2084_s1 + $0x38] sm:$0xff] }
   0x5   :  { %v1350_v11 = vcombine.high %v31_v7, %v35_v8  ;;  %v39_v14 = vld [vmem:[%s2084_s1 + $0x80] sm:$0xff]  ;;  %455 = vmatprep.subr.bf16.mxu0 %v1342_v4  ;;  %v1352_v15 = vcombine.high %v32_v12, %v36_v13  ;;  %v40_v17 = vld [vmem:[%s2084_s1 + $0x88] sm:$0xff]  ;;  %498 = vmatprep.subr.bf16.mxu1 %v1344_v9  ;;  %v1349_v19 = vcombine.low %v31_v7, %v35_v8  ;;  %v33_v5 = vld [vmem:[%s2084_s1 + $0x50] sm:$0xff] }
   0x6   :  { %v43_v16 = vld [vmem:[%s2084_s1 + $0xa0] sm:$0xff]  ;;  %v44_v18 = vld [vmem:[%s2084_s1 + $0xa8] sm:$0xff]  ;;  %456 = vmatpush1.bf16.msra.mxu0 %v1341_v6  ;;  %499 = vmatpush1.bf16.msra.mxu1 %v1343_v10  ;;  %v1351_v20 = vcombine.low %v32_v12, %v36_v13  ;;  %v1346_v8 = vcombine.high %v25_v60, %v29_v63  ;;  %v37_v9 = vld [vmem:[%s2084_s1 + $0x70] sm:$0xff]  ;;  %v1348_v10 = vcombine.high %v26_v1, %v30_v2 }
   0x7   :  { %457 = vmatprep.subr.bf16.mxu0 %v1350_v11  ;;  %v1358_v21 = vcombine.high %v39_v14, %v43_v16  ;;  %500 = vmatprep.subr.bf16.mxu1 %v1352_v15  ;;  %v1360_v22 = vcombine.high %v40_v17, %v44_v18  ;;  %v47_v23 = vld [vmem:[%s2084_s1 + $0xc0] sm:$0xff]  ;;  %v48_v25 = vld [vmem:[%s2084_s1 + $0xc8] sm:$0xff]  ;;  %v1357_v27 = vcombine.low %v39_v14, %v43_v16  ;;  %v34_v11 = vld [vmem:[%s2084_s1 + $0x58] sm:$0xff] }
   0x8   :  { %v51_v24 = vld [vmem:[%s2084_s1 + $0xe0] sm:$0xff]  ;;  %v52_v26 = vld [vmem:[%s2084_s1 + $0xe8] sm:$0xff]  ;;  %v1359_v28 = vcombine.low %v40_v17, %v44_v18  ;;  %v38_v12 = vld [vmem:[%s2084_s1 + $0x78] sm:$0xff]  ;;  %v1345_v13 = vcombine.low %v25_v60, %v29_v63  ;;  %v1347_v15 = vcombine.low %v26_v1, %v30_v2  ;;  %v1354_v16 = vcombine.high %v33_v5, %v37_v9 }
   0x9   :  { %v1366_v29 = vcombine.high %v47_v23, %v51_v24  ;;  %v1368_v30 = vcombine.high %v48_v25, %v52_v26  ;;  %v55_v31 = vld [vmem:[%s2084_s1 + $0x100] sm:$0xff]  ;;  %v56_v33 = vld [vmem:[%s2084_s1 + $0x108] sm:$0xff]  ;;  %v1365_v35 = vcombine.low %v47_v23, %v51_v24  ;;  %v1367_v36 = vcombine.low %v48_v25, %v52_v26  ;;  %v41_v14 = vld [vmem:[%s2084_s1 + $0x90] sm:$0xff] }
   0xa   :  { %458 = vmatpush1.bf16.msra.mxu0 %v1349_v19  ;;  %501 = vmatpush1.bf16.msra.mxu1 %v1351_v20  ;;  %v59_v32 = vld [vmem:[%s2084_s1 + $0x120] sm:$0xff]  ;;  %v60_v34 = vld [vmem:[%s2084_s1 + $0x128] sm:$0xff]  ;;  %v45_v17 = vld [vmem:[%s2084_s1 + $0xb0] sm:$0xff]  ;;  %v1356_v18 = vcombine.high %v34_v11, %v38_v12  ;;  %v1355_v23 = vcombine.low %v34_v11, %v38_v12 }
   0xb   :  { %459 = vmatprep.subr.bf16.mxu0 %v1358_v21  ;;  %502 = vmatprep.subr.bf16.mxu1 %v1360_v22  ;;  %v1374_v37 = vcombine.high %v55_v31, %v59_v32  ;;  %v1376_v38 = vcombine.high %v56_v33, %v60_v34  ;;  %v63_v39 = vld [vmem:[%s2084_s1 + $0x140] sm:$0xff]  ;;  %v64_v41 = vld [vmem:[%s2084_s1 + $0x148] sm:$0xff]  ;;  %v1373_v43 = vcombine.low %v55_v31, %v59_v32  ;;  %v42_v19 = vld [vmem:[%s2084_s1 + $0x98] sm:$0xff] }
   0xc   :  { %v67_v40 = vld [vmem:[%s2084_s1 + $0x160] sm:$0xff]  ;;  %v68_v42 = vld [vmem:[%s2084_s1 + $0x168] sm:$0xff]  ;;  %v1375_v44 = vcombine.low %v56_v33, %v60_v34  ;;  %v46_v20 = vld [vmem:[%s2084_s1 + $0xb8] sm:$0xff]  ;;  %v1353_v21 = vcombine.low %v33_v5, %v37_v9  ;;  %v1362_v24 = vcombine.high %v41_v14, %v45_v17 }
   0xd   :  { %v1382_v45 = vcombine.high %v63_v39, %v67_v40  ;;  %v1384_v46 = vcombine.high %v64_v41, %v68_v42  ;;  %v71_v47 = vld [vmem:[%s2084_s1 + $0x180] sm:$0xff]  ;;  %v72_v49 = vld [vmem:[%s2084_s1 + $0x188] sm:$0xff]  ;;  %v1381_v51 = vcombine.low %v63_v39, %v67_v40  ;;  %v1383_v52 = vcombine.low %v64_v41, %v68_v42  ;;  %v49_v22 = vld [vmem:[%s2084_s1 + $0xd0] sm:$0xff] }
   0xe   :  { %460 = vmatpush1.bf16.msra.mxu0 %v1357_v27  ;;  %503 = vmatpush1.bf16.msra.mxu1 %v1359_v28  ;;  %v75_v48 = vld [vmem:[%s2084_s1 + $0x1a0] sm:$0xff]  ;;  %v76_v50 = vld [vmem:[%s2084_s1 + $0x1a8] sm:$0xff]  ;;  %v53_v25 = vld [vmem:[%s2084_s1 + $0xf0] sm:$0xff]  ;;  %v1364_v26 = vcombine.high %v42_v19, %v46_v20  ;;  %v1363_v31 = vcombine.low %v42_v19, %v46_v20 }
   0xf   :  { %461 = vmatprep.subr.bf16.mxu0 %v1366_v29  ;;  %504 = vmatprep.subr.bf16.mxu1 %v1368_v30  ;;  %v1390_v53 = vcombine.high %v71_v47, %v75_v48  ;;  %v79_v54 = vld [vmem:[%s2084_s1 + $0x1c0] sm:$0xff]  ;;  %v1392_v56 = vcombine.high %v72_v49, %v76_v50  ;;  %v80_v57 = vld [vmem:[%s2084_s1 + $0x1c8] sm:$0xff]  ;;  %v1389_v59 = vcombine.low %v71_v47, %v75_v48  ;;  %v50_v27 = vld [vmem:[%s2084_s1 + $0xd8] sm:$0xff] }
  0x10   :  { %v83_v55 = vld [vmem:[%s2084_s1 + $0x1e0] sm:$0xff]  ;;  %v84_v58 = vld [vmem:[%s2084_s1 + $0x1e8] sm:$0xff]  ;;  %v1391_v61 = vcombine.low %v72_v49, %v76_v50  ;;  %v54_v28 = vld [vmem:[%s2084_s1 + $0xf8] sm:$0xff]  ;;  %v1361_v29 = vcombine.low %v41_v14, %v45_v17  ;;  %v1370_v32 = vcombine.high %v49_v22, %v53_v25 }
  0x11   :  { %v1398_v62 = vcombine.high %v79_v54, %v83_v55  ;;  %v1400_v0 = vcombine.high %v80_v57, %v84_v58  ;;  %v1397_v4 = vcombine.low %v79_v54, %v83_v55  ;;  %v1399_v6 = vcombine.low %v80_v57, %v84_v58  ;;  %v1771_v7 = vld [vmem:[%s2085_s0] sm:$0xff]   ;;  %v57_v30 = vld [vmem:[%s2084_s1 + $0x110] sm:$0xff]  ;;  %v66_v41 = vld [vmem:[%s2084_s1 + $0x158] sm:$0xff] }
  0x12   :  { %462 = vmatpush1.bf16.msra.mxu0 %v1365_v35  ;;  %505 = vmatpush1.bf16.msra.mxu1 %v1367_v36  ;;  %v61_v33 = vld [vmem:[%s2084_s1 + $0x130] sm:$0xff]  ;;  %v1372_v34 = vcombine.high %v50_v27, %v54_v28  ;;  %v62_v35 = vld [vmem:[%s2084_s1 + $0x138] sm:$0xff]  ;;  %v1369_v36 = vcombine.low %v49_v22, %v53_v25  ;;  %v1371_v39 = vcombine.low %v50_v27, %v54_v28  ;;  %v1561_v2 = vld [vmem:[%s2086_s3 + $0xc0] sm:$0xff]  }
  0x13   :  { %463 = vmatprep.subr.bf16.mxu0 %v1374_v37  ;;  %506 = vmatprep.subr.bf16.mxu1 %v1376_v38  ;;  %v65_v37 = vld [vmem:[%s2084_s1 + $0x150] sm:$0xff]  ;;  %v1378_v40 = vcombine.high %v57_v30, %v61_v33  ;;  %v70_v42 = vld [vmem:[%s2084_s1 + $0x178] sm:$0xff]  ;;  %v1562_v5 = vld [vmem:[%s2086_s3] sm:$0xff]  }
  0x14   :  { %v69_v38 = vld [vmem:[%s2084_s1 + $0x170] sm:$0xff]  ;;  %v74_v49 = vld [vmem:[%s2084_s1 + $0x198] sm:$0xff]  ;;  %v1387_v55 = vcombine.low %v66_v41, %v70_v42  ;;  %v1565_v9 = vld [vmem:[%s2086_s3 + $0xc8] sm:$0xff]  }
  0x15   :  { %v1386_v48 = vcombine.high %v65_v37, %v69_v38  ;;  %v78_v50 = vld [vmem:[%s2084_s1 + $0x1b8] sm:$0xff]  ;;  %v85_v54 = vld [vmem:[%s2084_s1 + $0x1f0] sm:$0xff]  ;;  %v1567_v11 = vld [vmem:[%s2086_s3 + $0x88] sm:$0xff]  }
  0x16   :  { %464 = vmatpush1.bf16.msra.mxu0 %v1373_v43  ;;  %507 = vmatpush1.bf16.msra.mxu1 %v1375_v44  ;;  %v1377_v44 = vcombine.low %v57_v30, %v61_v33  ;;  %v82_v57 = vld [vmem:[%s2084_s1 + $0x1d8] sm:$0xff]  ;;  %v1568_v12 = vld [vmem:[%s2086_s3 + $0x50] sm:$0xff]   ;;  %v1576_v19 = vld [vmem:[%s2086_s3 + $0x60] sm:$0xff]  }
  0x17   :  { %465 = vmatprep.subr.bf16.mxu0 %v1382_v45  ;;  %508 = vmatprep.subr.bf16.mxu1 %v1384_v46  ;;  %v73_v45 = vld [vmem:[%s2084_s1 + $0x190] sm:$0xff]  ;;  %v86_v58 = vld [vmem:[%s2084_s1 + $0x1f8] sm:$0xff]  ;;  %v1577_v20 = vld [vmem:[%s2086_s3 + $0xe0] sm:$0xff]  }
  0x18   :  { %v77_v46 = vld [vmem:[%s2084_s1 + $0x1b0] sm:$0xff]  ;;  %v1404_v63 = vcombine.high %v82_v57, %v86_v58  ;;  %v1574_v17 = vld [vmem:[%s2086_s3 + $0x18] sm:$0xff]   ;;  %v1579_v22 = vld [vmem:[%s2086_s3 + $0xa0] sm:$0xff]  }
  0x19   :  { %v1393_v60 = vcombine.low %v73_v45, %v77_v46  ;;  %v1570_v14 = vld [vmem:[%s2086_s3 + $0x10] sm:$0xff]   ;;  %v1582_v25 = vld [vmem:[%s2086_s3 + $0x28] sm:$0xff]   ;;  %v1590_v33 = vld [vmem:[%s2086_s3 + $0x38] sm:$0xff]  }
  0x1a   :  { %466 = vmatpush1.bf16.msra.mxu0 %v1381_v51  ;;  %509 = vmatpush1.bf16.msra.mxu1 %v1383_v52  ;;  %v1388_v51 = vcombine.high %v66_v41, %v70_v42  ;;  %v1385_v52 = vcombine.low %v65_v37, %v69_v38  ;;  %v1584_v27 = vld [vmem:[%s2086_s3 + $0x70] sm:$0xff]  }
  0x1b   :  { %467 = vmatprep.subr.bf16.mxu0 %v1390_v53  ;;  %510 = vmatprep.subr.bf16.mxu1 %v1392_v56  ;;  %v81_v53 = vld [vmem:[%s2084_s1 + $0x1d0] sm:$0xff]  ;;  %v1394_v56 = vcombine.high %v73_v45, %v77_v46 }
  0x1c   :  { %v1401_v1 = vcombine.low %v81_v53, %v85_v54  ;;  %v1585_v28 = vld [vmem:[%s2086_s3 + $0xf0] sm:$0xff]  }
  0x1d   :  { %v1587_v30 = vld [vmem:[%s2086_s3 + $0xb0] sm:$0xff]  }
  0x1e   :  { %468 = vmatpush1.bf16.msra.mxu0 %v1389_v59  ;;  %511 = vmatpush1.bf16.msra.mxu1 %v1391_v61  ;;  %v1396_v59 = vcombine.high %v74_v49, %v78_v50  ;;  %v1395_v61 = vcombine.low %v74_v49, %v78_v50 }
  0x1f   :  { %469 = vmatprep.subr.bf16.mxu0 %v1398_v62  ;;  %512 = vmatprep.subr.bf16.mxu1 %v1400_v0  ;;  %v1402_v62 = vcombine.high %v81_v53, %v85_v54  ;;  %v1560_v0 = vld [vmem:[%s2086_s3 + $0x40] sm:$0xff]  }
  0x22   :  { %470 = vmatpush1.bf16.msra.mxu0 %v1397_v4  ;;  %513 = vmatpush1.bf16.msra.mxu1 %v1399_v6  ;;  %v1403_v4 = vcombine.low %v82_v57, %v86_v58  ;;  %v1563_v6 = vld [vmem:[%s2086_s3 + $0x80] sm:$0xff]  }
  0x23   :  { %541 = vmatprep.subr.bf16.mxu0 %v1346_v8  ;;  %584 = vmatprep.subr.bf16.mxu1 %v1348_v10  ;;  %v1564_v8 = vld [vmem:[%s2086_s3 + $0x48] sm:$0xff]  }
  0x24   :  { %v1566_v10 = vld [vmem:[%s2086_s3 + $0x8] sm:$0xff]  }
  0x25   :  { %488 = vmatmul.mubr.bf16.vlgmr.msra.gmra.mrb[0].mxu0 %v1771_v7  ;;  %531 = vmatmul.mubr.bf16.vlgmr.msra.gmra.mrb[0].mxu1 %v1771_v7 }
  0x26   :  { %542 = vmatpush1.bf16.msra.mxu0 %v1345_v13  ;;  %585 = vmatpush1.bf16.msra.mxu1 %v1347_v15  ;;  %v1569_v13 = vld [vmem:[%s2086_s3 + $0xd0] sm:$0xff]  }
  0x27   :  { %543 = vmatprep.subr.bf16.mxu0 %v1354_v16  ;;  %586 = vmatprep.subr.bf16.mxu1 %v1356_v18  ;;  %v1571_v15 = vld [vmem:[%s2086_s3 + $0x90] sm:$0xff]   ;;  %v1573_v16 = vld [vmem:[%s2086_s3 + $0xd8] sm:$0xff]  }
  0x28   :  { %573 = vmatprep.mubr.bf16.mxu0 %v1624_v3  ;;  %616 = vmatprep.mubr.bf16.mxu1 %v1624_v3  ;;  %v58_v3 = vld [vmem:[%s2084_s1 + $0x118] sm:$0xff] }
  0x29   :  { %v1380_v43 = vcombine.high %v58_v3, %v62_v35  ;;  %v1379_v47 = vcombine.low %v58_v3, %v62_v35  ;;  %v1575_v18 = vld [vmem:[%s2086_s3 + $0x98] sm:$0xff]   ;;  %v1592_v3 = vld [vmem:[%s2086_s3 + $0x140] sm:$0xff]  }
  0x2a   :  { %544 = vmatpush1.bf16.msra.mxu0 %v1353_v21  ;;  %587 = vmatpush1.bf16.msra.mxu1 %v1355_v23  ;;  %v1578_v21 = vld [vmem:[%s2086_s3 + $0x20] sm:$0xff]   ;;  %v1580_v23 = vld [vmem:[%s2086_s3 + $0x68] sm:$0xff]  }
  0x2b   :  { %545 = vmatprep.subr.bf16.mxu0 %v1362_v24  ;;  %588 = vmatprep.subr.bf16.mxu1 %v1364_v26  ;;  %v1581_v24 = vld [vmem:[%s2086_s3 + $0xe8] sm:$0xff]   ;;  %v1593_v35 = vld [vmem:[%s2086_s3 + $0x1c0] sm:$0xff]  }
  0x2c   :  { %v1583_v26 = vld [vmem:[%s2086_s3 + $0xa8] sm:$0xff]  }
  0x2e   :  { %546 = vmatpush1.bf16.msra.mxu0 %v1361_v29  ;;  %589 = vmatpush1.bf16.msra.mxu1 %v1363_v31  ;;  %v1586_v29 = vld [vmem:[%s2086_s3 + $0x30] sm:$0xff]   ;;  %v1588_v31 = vld [vmem:[%s2086_s3 + $0x78] sm:$0xff]  }
  0x2f   :  { %547 = vmatprep.subr.bf16.mxu0 %v1370_v32  ;;  %590 = vmatprep.subr.bf16.mxu1 %v1372_v34  ;;  %v1589_v32 = vld [vmem:[%s2086_s3 + $0xf8] sm:$0xff]  }
  0x30   :  { %v1591_v34 = vld [vmem:[%s2086_s3 + $0xb8] sm:$0xff]  }
  0x32   :  { %548 = vmatpush1.bf16.msra.mxu0 %v1369_v36  ;;  %591 = vmatpush1.bf16.msra.mxu1 %v1371_v39  ;;  %v89_v36 = vlaneseq  ;;  %v1968_v39 = vld [vmem:[%s2087_s2] sm:$0xff] }
  0x33   :  { %549 = vmatprep.subr.bf16.mxu0 %v1378_v40  ;;  %592 = vmatprep.subr.bf16.mxu1 %v1380_v43 }
  0x34   :  { %v1962_v37 = vshrl.u32 %v89_v36, 7 }
  0x36   :  { %550 = vmatpush1.bf16.msra.mxu0 %v1377_v44  ;;  %593 = vmatpush1.bf16.msra.mxu1 %v1379_v47  ;;  %v91_v38 = vsub.s32 0, %v1962_v37  ;;  %v99_v40 = vsub.s32 2, %v1962_v37  ;;  %v95_v41 = vsub.s32 1, %v1962_v37  ;;  %v103_v42 = vsub.s32 3, %v1962_v37 }
  0x37   :  { %551 = vmatprep.subr.bf16.mxu0 %v1386_v48  ;;  %594 = vmatprep.subr.bf16.mxu1 %v1388_v51 }
  0x38   :  { %v92_v43 = vrot.slane %v1968_v39, %v91_v38  ;;  %v100_v44 = vrot.slane %v1968_v39, %v99_v40  ;;  %v96_v45 = vrot.slane %v1968_v39, %v95_v41  ;;  %v104_v46 = vrot.slane %v1968_v39, %v103_v42  ;;  %v1615_v38 = vld [vmem:[%s2086_s3 + $0x1a8] sm:$0xff]   ;;  %v1616_v40 = vld [vmem:[%s2086_s3 + $0x170] sm:$0xff]  }
  0x39   :  { %v1617_v42 = vld [vmem:[%s2086_s3 + $0x1f0] sm:$0xff]  }
  0x3a   :  { %552 = vmatpush1.bf16.msra.mxu0 %v1385_v52  ;;  %595 = vmatpush1.bf16.msra.mxu1 %v1387_v55 }
  0x3b   :  { %553 = vmatprep.subr.bf16.mxu0 %v1394_v56  ;;  %596 = vmatprep.subr.bf16.mxu1 %v1396_v59 }
  0x3e   :  { %554 = vmatpush1.bf16.msra.mxu0 %v1393_v60  ;;  %597 = vmatpush1.bf16.msra.mxu1 %v1395_v61 }
  0x3f   :  { %555 = vmatprep.subr.bf16.mxu0 %v1402_v62  ;;  %598 = vmatprep.subr.bf16.mxu1 %v1404_v63 }
  0x42   :  { %556 = vmatpush1.bf16.msra.mxu0 %v1401_v1  ;;  %599 = vmatpush1.bf16.msra.mxu1 %v1403_v4 }
  0x43   :  { %1470 = vmatprep.subr.bf16.mxu0 %v1560_v0  ;;  %1492 = vmatprep.subr.bf16.mxu1 %v1561_v2 }
  0x45   :  { %574 = vmatmul.mubr.bf16.vlgmr.msra.gmra.mrb[4].mxu0 %v1771_v7  ;;  %617 = vmatmul.mubr.bf16.vlgmr.msra.gmra.mrb[4].mxu1 %v1771_v7  ;;  %v1572_v7 = vld [vmem:[%s2086_s3 + $0x58] sm:$0xff]  }
  0x46   :  { %1471 = vmatpush3.bf16.msra.mxu0 %v1562_v5  ;;  %1493 = vmatpush3.bf16.msra.mxu1 %v1563_v6 }
  0x47   :  { %1472 = vmatprep.subr.bf16.mxu0 %v1564_v8  ;;  %1494 = vmatprep.subr.bf16.mxu1 %v1565_v9 }
  0x4a   :  { %1473 = vmatpush3.bf16.msra.mxu0 %v1566_v10  ;;  %1495 = vmatpush3.bf16.msra.mxu1 %v1567_v11 }
  0x4b   :  { %1474 = vmatprep.subr.bf16.mxu0 %v1568_v12  ;;  %1496 = vmatprep.subr.bf16.mxu1 %v1569_v13  ;;  %v1594_v12 = vld [vmem:[%s2086_s3 + $0x100] sm:$0xff]  }
  0x4e   :  { %1475 = vmatpush3.bf16.msra.mxu0 %v1570_v14  ;;  %1497 = vmatpush3.bf16.msra.mxu1 %v1571_v15  ;;  %v1595_v14 = vld [vmem:[%s2086_s3 + $0x180] sm:$0xff]   ;;  %v1596_v15 = vld [vmem:[%s2086_s3 + $0x148] sm:$0xff]  }
  0x4f   :  { %1476 = vmatprep.subr.bf16.mxu0 %v1572_v7  ;;  %1498 = vmatprep.subr.bf16.mxu1 %v1573_v16  ;;  %v1597_v7 = vld [vmem:[%s2086_s3 + $0x1c8] sm:$0xff]  }
  0x50   :  { %v1598_v16 = vld [vmem:[%s2086_s3 + $0x108] sm:$0xff]  }
  0x52   :  { %1477 = vmatpush3.bf16.msra.mxu0 %v1574_v17  ;;  %1499 = vmatpush3.bf16.msra.mxu1 %v1575_v18  ;;  %v1599_v17 = vld [vmem:[%s2086_s3 + $0x188] sm:$0xff]   ;;  %v1600_v18 = vld [vmem:[%s2086_s3 + $0x150] sm:$0xff]  }
  0x53   :  { %1478 = vmatprep.subr.bf16.mxu0 %v1576_v19  ;;  %1500 = vmatprep.subr.bf16.mxu1 %v1577_v20  ;;  %v1601_v19 = vld [vmem:[%s2086_s3 + $0x1d0] sm:$0xff]  }
  0x54   :  { %v1602_v20 = vld [vmem:[%s2086_s3 + $0x110] sm:$0xff]  }
  0x56   :  { %1479 = vmatpush3.bf16.msra.mxu0 %v1578_v21  ;;  %1501 = vmatpush3.bf16.msra.mxu1 %v1579_v22  ;;  %v1603_v21 = vld [vmem:[%s2086_s3 + $0x190] sm:$0xff]   ;;  %v1604_v22 = vld [vmem:[%s2086_s3 + $0x158] sm:$0xff]  }
  0x57   :  { %1480 = vmatprep.subr.bf16.mxu0 %v1580_v23  ;;  %1502 = vmatprep.subr.bf16.mxu1 %v1581_v24  ;;  %v1605_v23 = vld [vmem:[%s2086_s3 + $0x1d8] sm:$0xff]  }
  0x58   :  { %v1606_v24 = vld [vmem:[%s2086_s3 + $0x118] sm:$0xff]  }
  0x5a   :  { %1481 = vmatpush3.bf16.msra.mxu0 %v1582_v25  ;;  %1503 = vmatpush3.bf16.msra.mxu1 %v1583_v26  ;;  %v1607_v25 = vld [vmem:[%s2086_s3 + $0x198] sm:$0xff]   ;;  %v1608_v26 = vld [vmem:[%s2086_s3 + $0x160] sm:$0xff]  }
  0x5b   :  { %1482 = vmatprep.subr.bf16.mxu0 %v1584_v27  ;;  %1504 = vmatprep.subr.bf16.mxu1 %v1585_v28  ;;  %v1609_v27 = vld [vmem:[%s2086_s3 + $0x1e0] sm:$0xff]  }
  0x5c   :  { %v1610_v28 = vld [vmem:[%s2086_s3 + $0x120] sm:$0xff]  }
  0x5e   :  { %1483 = vmatpush3.bf16.msra.mxu0 %v1586_v29  ;;  %1505 = vmatpush3.bf16.msra.mxu1 %v1587_v30  ;;  %v1611_v29 = vld [vmem:[%s2086_s3 + $0x1a0] sm:$0xff]   ;;  %v1612_v30 = vld [vmem:[%s2086_s3 + $0x168] sm:$0xff]  }
  0x5f   :  { %1484 = vmatprep.subr.bf16.mxu0 %v1588_v31  ;;  %1506 = vmatprep.subr.bf16.mxu1 %v1589_v32  ;;  %v107_v31 = vsub.s32 4, %v1962_v37  ;;  %v1613_v32 = vld [vmem:[%s2086_s3 + $0x1e8] sm:$0xff]  }
  0x61   :  { %v108_v36 = vrot.slane %v1968_v39, %v107_v31 }
  0x62   :  { %1485 = vmatpush3.bf16.msra.mxu0 %v1590_v33  ;;  %1507 = vmatpush3.bf16.msra.mxu1 %v1591_v34  ;;  %v115_v33 = vsub.s32 6, %v1962_v37  ;;  %v111_v34 = vsub.s32 5, %v1962_v37 }
  0x63   :  { %1514 = vmatprep.subr.bf16.mxu0 %v1592_v3  ;;  %1536 = vmatprep.subr.bf16.mxu1 %v1593_v35  ;;  %v119_v3 = vsub.s32 7, %v1962_v37  ;;  %v1614_v35 = vld [vmem:[%s2086_s3 + $0x128] sm:$0xff]  }
  0x64   :  { %v116_v37 = vrot.slane %v1968_v39, %v115_v33  ;;  %v112_v41 = vrot.slane %v1968_v39, %v111_v34 }
  0xf8   :  { %v489_v47 = vpop.f32.mrb[0].mxu0  ;;  %v532_v49 = vpop.f32.mrb[0].mxu1 }
  0xf9   :  { %v490_v48 = vadd.f32 %v489_v47, %v92_v43  ;;  %v491_v50 = vpop.f32.mrb[1].mxu0  ;;  %v533_v51 = vadd.f32 %v532_v49, %v100_v44  ;;  %v534_v53 = vpop.f32.mrb[1].mxu1  ;;  %v1619_v49 = vld [vmem:[%s2086_s3 + $0x1b0] sm:$0xff]  }
  0xfa   :  { %v492_v52 = vadd.f32 %v491_v50, %v96_v45  ;;  %v493_v54 = vpop.f32.mrb[2].mxu0  ;;  %v535_v56 = vadd.f32 %v534_v53, %v104_v46  ;;  %v536_v58 = vpop.f32.mrb[2].mxu1  ;;  %v1620_v50 = vld [vmem:[%s2086_s3 + $0x178] sm:$0xff]  }
  0xfb   :  { %v627_v55 = vmax.f32 %v490_v48, 0.0  ;;  %v494_v57 = vadd.f32 %v493_v54, %v92_v43  ;;  %v495_v59 = vpop.f32.mrb[3].mxu0  ;;  %v629_v60 = vmax.f32 %v533_v51, 0.0  ;;  %v537_v61 = vadd.f32 %v536_v58, %v100_v44  ;;  %v538_v63 = vpop.f32.mrb[3].mxu1  ;;  %v1621_v54 = vld [vmem:[%s2086_s3 + $0x1f8] sm:$0xff]  }
  0xfc   :  { %v496_v62 = vadd.f32 %v495_v59, %v96_v45  ;;  %v630_v0 = vmax.f32 %v535_v56, 0.0  ;;  %v539_v2 = vadd.f32 %v538_v63, %v104_v46  ;;  %v628_v4 = vmax.f32 %v492_v52, 0.0  ;;  %v1618_v45 = vld [vmem:[%s2086_s3 + $0x130] sm:$0xff]   ;;  %v1622_v63 = vld [vmem:[%s2086_s3 + $0x138] sm:$0xff]  }
  0xfd   :  { %v635_v1 = vmax.f32 %v494_v57, 0.0  ;;  %v637_v5 = vmax.f32 %v537_v61, 0.0  ;;  %v120_v43 = vrot.slane %v1968_v39, %v119_v3 }
  0xfe   :  { %v636_v6 = vmax.f32 %v496_v62, 0.0  ;;  %v638_v9 = vmax.f32 %v539_v2, 0.0 }
  0xff   :  { %v643_v8 = vpack.c.bf16 %v635_v1, %v627_v55  ;;  %v645_v10 = vpack.c.bf16 %v637_v5, %v629_v60  ;;  %v1623_v5 = vld [vmem:[%s2086_s3 + $0x1b8] sm:$0xff]  }
 0x100   :  { %v644_v11 = vpack.c.bf16 %v636_v6, %v628_v4  ;;  %v646_v13 = vpack.c.bf16 %v638_v9, %v630_v0 }
 0x102   :  { %1202 = vmatprep.mubr.bf16.mxu0 %v644_v11  ;;  %1243 = vmatprep.mubr.bf16.mxu1 %v646_v13 }
 0x103   :  { %1203 = vmatmul.mubr.bf16.vlgmr.msra.gmra.mrb[8].mxu0 %v643_v8  ;;  %1244 = vmatmul.mubr.bf16.vlgmr.msra.gmra.mrb[8].mxu1 %v645_v10 }
 0x104   :  { %1515 = vmatpush3.bf16.msra.mxu0 %v1594_v12  ;;  %1537 = vmatpush3.bf16.msra.mxu1 %v1595_v14 }
 0x105   :  { %1516 = vmatprep.subr.bf16.mxu0 %v1596_v15  ;;  %1538 = vmatprep.subr.bf16.mxu1 %v1597_v7 }
 0x108   :  { %1517 = vmatpush3.bf16.msra.mxu0 %v1598_v16  ;;  %1539 = vmatpush3.bf16.msra.mxu1 %v1599_v17  ;;  %v1405_v16 = vld [vmem:[%s2088_s4] ss:$0 sm:$0xff] }
 0x109   :  { %1518 = vmatprep.subr.bf16.mxu0 %v1600_v18  ;;  %1540 = vmatprep.subr.bf16.mxu1 %v1601_v19 }
 0x10c   :  { %1519 = vmatpush3.bf16.msra.mxu0 %v1602_v20  ;;  %1541 = vmatpush3.bf16.msra.mxu1 %v1603_v21 }
 0x10d   :  { %1520 = vmatprep.subr.bf16.mxu0 %v1604_v22  ;;  %1542 = vmatprep.subr.bf16.mxu1 %v1605_v23 }
 0x110   :  { %1521 = vmatpush3.bf16.msra.mxu0 %v1606_v24  ;;  %1543 = vmatpush3.bf16.msra.mxu1 %v1607_v25 }
 0x111   :  { %1522 = vmatprep.subr.bf16.mxu0 %v1608_v26  ;;  %1544 = vmatprep.subr.bf16.mxu1 %v1609_v27 }
 0x114   :  { %1523 = vmatpush3.bf16.msra.mxu0 %v1610_v28  ;;  %1545 = vmatpush3.bf16.msra.mxu1 %v1611_v29 }
 0x115   :  { %1524 = vmatprep.subr.bf16.mxu0 %v1612_v30  ;;  %1546 = vmatprep.subr.bf16.mxu1 %v1613_v32 }
 0x118   :  { %v575_v44 = vpop.f32.mrb[4].mxu0  ;;  %1525 = vmatpush3.bf16.msra.mxu0 %v1614_v35  ;;  %v618_v47 = vpop.f32.mrb[4].mxu1  ;;  %1547 = vmatpush3.bf16.msra.mxu1 %v1615_v38 }
 0x119   :  { %v576_v46 = vadd.f32 %v575_v44, %v108_v36  ;;  %v577_v48 = vpop.f32.mrb[5].mxu0  ;;  %1526 = vmatprep.subr.bf16.mxu0 %v1616_v40  ;;  %v619_v39 = vadd.f32 %v618_v47, %v116_v37  ;;  %v620_v52 = vpop.f32.mrb[5].mxu1  ;;  %1548 = vmatprep.subr.bf16.mxu1 %v1617_v42 }
 0x11a   :  { %v578_v51 = vadd.f32 %v577_v48, %v112_v41  ;;  %v579_v53 = vpop.f32.mrb[6].mxu0  ;;  %v621_v55 = vadd.f32 %v620_v52, %v120_v43  ;;  %v622_v57 = vpop.f32.mrb[6].mxu1 }
 0x11b   :  { %v580_v56 = vadd.f32 %v579_v53, %v108_v36  ;;  %v581_v58 = vpop.f32.mrb[7].mxu0  ;;  %v633_v59 = vmax.f32 %v619_v39, 0.0  ;;  %v623_v60 = vadd.f32 %v622_v57, %v116_v37  ;;  %v624_v62 = vpop.f32.mrb[7].mxu1  ;;  %v631_v0 = vmax.f32 %v576_v46, 0.0 }
 0x11c   :  { %v582_v61 = vadd.f32 %v581_v58, %v112_v41  ;;  %1527 = vmatpush3.bf16.msra.mxu0 %v1618_v45  ;;  %v634_v1 = vmax.f32 %v621_v55, 0.0  ;;  %v625_v4 = vadd.f32 %v624_v62, %v120_v43  ;;  %1549 = vmatpush3.bf16.msra.mxu1 %v1619_v49  ;;  %v632_v6 = vmax.f32 %v578_v51, 0.0 }
 0x11d   :  { %v639_v2 = vmax.f32 %v580_v56, 0.0  ;;  %1528 = vmatprep.subr.bf16.mxu0 %v1620_v50  ;;  %v641_v8 = vmax.f32 %v623_v60, 0.0  ;;  %1550 = vmatprep.subr.bf16.mxu1 %v1621_v54 }
 0x11e   :  { %v640_v9 = vmax.f32 %v582_v61, 0.0  ;;  %v642_v11 = vmax.f32 %v625_v4, 0.0 }
 0x11f   :  { %v647_v10 = vpack.c.bf16 %v639_v2, %v631_v0  ;;  %v649_v12 = vpack.c.bf16 %v641_v8, %v633_v59 }
 0x120   :  { %v648_v13 = vpack.c.bf16 %v640_v9, %v632_v6  ;;  %1529 = vmatpush3.bf16.msra.mxu0 %v1622_v63  ;;  %v650_v14 = vpack.c.bf16 %v642_v11, %v634_v1  ;;  %1551 = vmatpush3.bf16.msra.mxu1 %v1623_v5 }
 0x122   :  { %1284 = vmatprep.mubr.bf16.mxu0 %v648_v13  ;;  %1325 = vmatprep.mubr.bf16.mxu1 %v650_v14 }
 0x123   :  { %1285 = vmatmul.mubr.bf16.vlgmr.msra.gmra.mrb[12].mxu0 %v647_v10  ;;  %1326 = vmatmul.mubr.bf16.vlgmr.msra.gmra.mrb[12].mxu1 %v649_v12 }
 0x1d6   :  { %v1486_v15 = vpop.f32.mrb[8].mxu0  ;;  %v1508_v7 = vpop.f32.mrb[8].mxu1 }
 0x1d7   :  { %v1487_v17 = vpop.f32.mrb[9].mxu0  ;;  %v1509_v19 = vpop.f32.mrb[9].mxu1 }
 0x1d8   :  { %v1488_v18 = vadd.f32 %v1487_v17, %v1486_v15  ;;  %v1489_v20 = vpop.f32.mrb[10].mxu0  ;;  %v1510_v21 = vadd.f32 %v1509_v19, %v1508_v7  ;;  %v1511_v22 = vpop.f32.mrb[10].mxu1 }
 0x1d9   :  { %v1490_v23 = vpop.f32.mrb[11].mxu0  ;;  %v1512_v26 = vpop.f32.mrb[11].mxu1 }
 0x1da   :  { %v1205_v24 = vadd.f32 %v1488_v18, %v1405_v16  ;;  %v1491_v25 = vadd.f32 %v1490_v23, %v1489_v20  ;;  %v1513_v27 = vadd.f32 %v1512_v26, %v1511_v22 }
 0x1dc   :  { %v1246_v28 = vadd.f32 %v1510_v21, %v1205_v24  ;;  %v1208_v29 = vadd.f32 %v1491_v25, %v1405_v16 }
 0x1de   :  { %v1249_v30 = vadd.f32 %v1513_v27, %v1208_v29 }
 0x1f6   :  { %v1530_v31 = vpop.f32.mrb[12].mxu0  ;;  %v1552_v32 = vpop.f32.mrb[12].mxu1 }
 0x1f7   :  { %v1531_v33 = vpop.f32.mrb[13].mxu0  ;;  %v1553_v3 = vpop.f32.mrb[13].mxu1 }
 0x1f8   :  { %v1532_v34 = vadd.f32 %v1531_v33, %v1530_v31  ;;  %v1533_v35 = vpop.f32.mrb[14].mxu0  ;;  %v1554_v36 = vadd.f32 %v1553_v3, %v1552_v32  ;;  %v1555_v38 = vpop.f32.mrb[14].mxu1 }
 0x1f9   :  { %v1534_v40 = vpop.f32.mrb[15].mxu0  ;;  %v1556_v42 = vpop.f32.mrb[15].mxu1 }
 0x1fa   :  { %v1287_v37 = vadd.f32 %v1532_v34, %v1246_v28  ;;  %v1535_v41 = vadd.f32 %v1534_v40, %v1533_v35  ;;  %v1557_v43 = vadd.f32 %v1556_v42, %v1555_v38 }
 0x1fc   :  { %v1328_v44 = vadd.f32 %v1554_v36, %v1287_v37  ;;  %v1290_v45 = vadd.f32 %v1535_v41, %v1249_v30 }
 0x1fe   :  { %1334 = vst [vmem:[%s2089_s5] sm:$0xff] %v1328_v44  ;;  %v1331_v46 = vadd.f32 %v1557_v43, %v1290_v45 }
 0x200   :  { %1335 = vst [vmem:[%s2089_s5 + $0x8] sm:$0xff] %v1331_v46 }

</bundles_post_ra>
